<compile_context>
chip_gen: v7x
topology: tpu7x:2x2x1
jax: 0.10.0
libtpu: 0.0.40
codegen_flags: <defaults>
</compile_context>

<pallas_src>
import jax
import jax.numpy as jnp
from jax.experimental import pallas as pl
from jax.experimental.pallas import tpu as pltpu


_RB_M = 32    # sub-block sublanes (src); tm is always a multiple of 32 (int8 adj)
_RB_N = 256   # sub-block lanes (dst); (32, 256) f32 accumulator = 8 vregs


def _distance_denominator_kernel(counts_ref, fs_ref, fdt_ref, ssrc_ref,
                                 sdst_ref, adj_ref, dinv_ref):
    """One (dst-tile, src-tile) step of the masked distance-softmax denominator.

    counts_ref: (n_dst_tiles, n_src_tiles) int32 SMEM (scalar-prefetched):
                number of edges whose (src, dst) land in this tile pair.
    fs_ref:     (TM, F)  f32 source-node features (src on sublanes)
    fdt_ref:    (F, TN)  f32 destination-node features, transposed (dst lanes)
    ssrc_ref:   (TM, 1)  f32 per-source-node feature sums
    sdst_ref:   (1, TN)  f32 per-destination-node feature sums
    adj_ref:    (TM, TN) int8 mask, adj[u, v] = 1 iff edge u -> v exists
    dinv_ref:   (1, TN)  f32 accumulator over src tiles; finalized to 1/denom
    """
    dj = pl.program_id(0)                       # dst-tile index (parallel axis)
    si = pl.program_id(1)                       # src-tile index (reduction axis)
    n_src_tiles = pl.num_programs(1)

    @pl.when(si == 0)
    def _init():
        dinv_ref[...] = jnp.zeros_like(dinv_ref)

    # Sparsity gate: skip all compute when this (src-tile, dst-tile) pair has
    # no edges (the denominator contribution would be exactly zero).
    @pl.when(counts_ref[dj, si] > 0)
    def _compute():
        tm, feat_dim = fs_ref.shape
        tn = fdt_ref.shape[1]
        for n0 in range(0, tn, _RB_N):
            nb = min(_RB_N, tn - n0)
            fdt_blk = fdt_ref[:, n0:n0 + nb]          # (F, nb)
            sdst_blk = sdst_ref[:, n0:n0 + nb]        # (1, nb)
            part = jnp.zeros((1, nb), jnp.float32)
            for m0 in range(0, tm, _RB_M):
                mb = min(_RB_M, tm - m0)
                fs_blk = fs_ref[m0:m0 + mb, :]        # (mb, F)
                ssrc_blk = ssrc_ref[m0:m0 + mb, :]    # (mb, 1)
                adj_blk = adj_ref[m0:m0 + mb, n0:n0 + nb]
                # Register-resident min-sum accumulator, feature loop innermost:
                # 2 VALU ops (min + add) per element per feature, no VMEM
                # round-trips of the accumulator.
                dmin = jnp.zeros((mb, nb), jnp.float32)
                for f in range(feat_dim):
                    dmin = dmin + jnp.minimum(fs_blk[:, f:f + 1],
                                              fdt_blk[f:f + 1, :])
                d = ssrc_blk + sdst_blk - 2.0 * dmin  # L1 distance
                score = jnp.exp(-0.01 * d)            # in (0, 1]
                # bounded score -> softmax needs no max-shift pass
                p = jnp.where(adj_blk != 0, jnp.exp(score), 0.0)
                part = part + jnp.sum(p, axis=0, keepdims=True)
            dinv_ref[:, n0:n0 + nb] += part

    @pl.when(si == n_src_tiles - 1)
    def _finalize():
        den = dinv_ref[...]
        safe = jnp.where(den > 0, den, 1.0)
        inv = pl.reciprocal(safe, approx=True)
        inv = inv * (2.0 - safe * inv)                # one Newton step (~exact)
        dinv_ref[...] = jnp.where(den > 0, inv, 0.0)  # 0 for isolated dsts


def _round_up(a, b):
    return (a + b - 1) // b * b


def distance_net_forward(src, dst, feats, num_nodes, *,
                         tile_src=256, tile_dst=1024):
    """Pallas implementation of distanceNet.forward.

    src, dst: (E,) int32 edge endpoints (edge k goes src[k] -> dst[k]).
              Duplicate (parallel) edges are NOT supported (dense adjacency).
    feats:    (N, F) float32 node features
    returns:  (E, 1) float32 edge-softmax values
    """
    n = int(num_nodes)
    f_dim = int(feats.shape[1])
    feats = feats.astype(jnp.float32)
    src = src.astype(jnp.int32)
    dst = dst.astype(jnp.int32)

    # Tile sizes: src (sublane) axis in multiples of 32 (int8 adj packing),
    # dst (lane) axis in multiples of 128 (lane-dense loads/stores).
    tile_src = _round_up(max(int(tile_src), 32), 32)
    tile_dst = _round_up(max(int(tile_dst), 128), 128)
    tm = min(tile_src, _round_up(n, 32))
    tn = min(tile_dst, _round_up(n, 128))
    n_src = _round_up(n, tm)
    n_dst = _round_up(n, tn)
    n_src_tiles = n_src // tm
    n_dst_tiles = n_dst // tn

    # Layout plumbing (plain JAX).
    # TODO(synk): cache adj/tile_counts/padded feature copies across calls when
    # the graph is static -- the O(N^2) scatter can rival the kernel time.
    node_sums = jnp.sum(feats, axis=1)
    feats_src = jnp.zeros((n_src, f_dim), jnp.float32).at[:n].set(feats)
    feats_dst_t = jnp.zeros((f_dim, n_dst), jnp.float32).at[:, :n].set(feats.T)
    sum_src = jnp.zeros((n_src, 1), jnp.float32).at[:n, 0].set(node_sums)
    sum_dst = jnp.zeros((1, n_dst), jnp.float32).at[0, :n].set(node_sums)
    adj = jnp.zeros((n_src, n_dst), jnp.int8).at[src, dst].set(1)
    # Per-(dst-tile, src-tile) edge counts for the sparsity gate (SMEM prefetch).
    tile_counts = jnp.zeros((n_dst_tiles, n_src_tiles), jnp.int32).at[
        dst // tn, src // tm].add(1)

    grid = (n_dst_tiles, n_src_tiles)   # (parallel dst, reduction src -- last)

    cost = pl.CostEstimate(
        flops=int(n_src * n_dst * (2 * f_dim + 8)),
        transcendentals=int(2 * n_src * n_dst),
        bytes_accessed=int(n_src * n_dst                      # int8 adj
                           + n_dst_tiles * n_src * f_dim * 4  # fs re-reads
                           + n_src_tiles * n_dst * f_dim * 4  # fdt re-reads
                           + n_dst * 4),                      # denom out
    )

    denom_inv = pl.pallas_call(
        _distance_denominator_kernel,
        out_shape=jax.ShapeDtypeStruct((1, n_dst), jnp.float32),
        grid_spec=pltpu.PrefetchScalarGridSpec(
            num_scalar_prefetch=1,
            grid=grid,
            in_specs=[
                pl.BlockSpec((tm, f_dim), lambda j, i, c: (i, 0)),  # src feats
                pl.BlockSpec((f_dim, tn), lambda j, i, c: (0, j)),  # dst feats^T
                pl.BlockSpec((tm, 1),     lambda j, i, c: (i, 0)),  # src sums
                pl.BlockSpec((1, tn),     lambda j, i, c: (0, j)),  # dst sums
                pl.BlockSpec((tm, tn),    lambda j, i, c: (i, j)),  # int8 adj
            ],
            out_specs=pl.BlockSpec((1, tn), lambda j, i, c: (0, j)),
        ),
        compiler_params=pltpu.CompilerParams(
            # TODO(synk): pltpu.CORE_PARALLEL on the dst axis for v7x megacore.
            dimension_semantics=("parallel", "arbitrary"),
            vmem_limit_bytes=32 * 1024 * 1024,
        ),
        cost_estimate=cost,
    )(tile_counts, feats_src, feats_dst_t, sum_src, sum_dst, adj)

    # Per-edge numerator: O(E*F) vectorized JAX with contiguous row gathers.
    # No dense N^2 numerator is written back from the kernel any more.
    score_e = jnp.exp(-0.01 * jnp.sum(jnp.abs(feats[src] - feats[dst]), axis=-1))
    e = jnp.exp(score_e) * denom_inv[0, dst]
    return e.reshape(-1, 1)


def _reference_forward(src, dst, feats, num_nodes):
    """Pure-JAX reference matching the torch/DGL semantics."""
    diff = feats[src] - feats[dst]                          # (E, F)
    score = jnp.exp(-0.01 * jnp.sum(jnp.abs(diff), -1))     # (E,)
    seg_max = jax.ops.segment_max(score, dst, num_segments=num_nodes)
    shifted = jnp.exp(score - seg_max[dst])
    seg_sum = jax.ops.segment_sum(shifted, dst, num_segments=num_nodes)
    return (shifted / seg_sum[dst]).reshape(-1, 1)


def _ring_graph(n, offsets):
    """Each node v receives edges from (v - k) % n for k in offsets (no dups)."""
    base = jnp.arange(n, dtype=jnp.int32)
    src = jnp.concatenate([base for _ in offsets])
    dst = jnp.concatenate([(base + k) % n for k in offsets]).astype(jnp.int32)
    return src, dst


if __name__ == "__main__":
    key = jax.random.PRNGKey(0)

    # Test 1: small graph, single-tile grid.
    N1, F1 = 8, 32
    feats1 = jax.random.normal(key, (N1, F1), dtype=jnp.float32)
    src1, dst1 = _ring_graph(N1, (1, 2, 3))
    out1 = jax.block_until_ready(distance_net_forward(src1, dst1, feats1, N1))
    ref1 = _reference_forward(src1, dst1, feats1, N1)
    assert out1.shape == (src1.shape[0], 1)
    assert jnp.allclose(out1, ref1, atol=1e-3, rtol=1e-3), (out1, ref1)

    # Test 2: multi-tile grid exercising the cross-src-tile denominator
    # accumulator, the register-blocked sub-tiles, and the sparsity gate
    # (several (src-tile, dst-tile) pairs of the ring graph contain no edges).
    N2, F2 = 200, 32
    feats2 = jax.random.normal(jax.random.PRNGKey(1), (N2, F2), dtype=jnp.float32)
    src2, dst2 = _ring_graph(N2, (1, 2, 3, 4, 5))
    out2 = jax.block_until_ready(
        distance_net_forward(src2, dst2, feats2, N2, tile_src=64, tile_dst=128))
    ref2 = _reference_forward(src2, dst2, feats2, N2)
    assert out2.shape == (src2.shape[0], 1)
    assert jnp.allclose(out2, ref2, atol=1e-3, rtol=1e-3), (out2, ref2)

    print("KERNEL_OK")
</pallas_src>

<mosaic_0001>
module attributes {stable_mosaic.version = 11 : i64} {
  func.func @_distance_denominator_kernel(%arg0: i32, %arg1: i32, %arg2: memref<1x1xi32, #tpu.memory_space<smem>>, %arg3: memref<32x32xf32, #tpu.memory_space<vmem>>, %arg4: memref<32x128xf32, #tpu.memory_space<vmem>>, %arg5: memref<32x1xf32, #tpu.memory_space<vmem>>, %arg6: memref<1x128xf32, #tpu.memory_space<vmem>>, %arg7: memref<32x128xi8, #tpu.memory_space<vmem>>, %arg8: memref<1x128xf32, #tpu.memory_space<vmem>>) attributes {dimension_semantics = [#tpu.dimension_semantics<parallel>, #tpu.dimension_semantics<arbitrary>], iteration_bounds = array<i64: 1, 1>, scalar_prefetch = 1 : i64, scratch_operands = 0 : i64, tpu.core_type = #tpu.core_type<tc>, window_params = [{transform_indices = @transform_0, window_bounds = array<i64: 32, 32>}, {transform_indices = @transform_1, window_bounds = array<i64: 32, 128>}, {transform_indices = @transform_2, window_bounds = array<i64: 32, 1>}, {transform_indices = @transform_3, window_bounds = array<i64: 1, 128>}, {transform_indices = @transform_4, window_bounds = array<i64: 32, 128>}, {transform_indices = @transform_5, window_bounds = array<i64: 1, 128>}]} {
    %c0_i32 = arith.constant 0 : i32
    %0 = arith.cmpi eq, %arg1, %c0_i32 : i32
    %1 = arith.extui %0 : i1 to i32
    %c0_i32_0 = arith.constant 0 : i32
    %2 = arith.cmpi ne, %1, %c0_i32_0 : i32
    scf.if %2 {
      %cst = arith.constant 0.000000e+00 : f32
      %12 = vector.broadcast %cst : f32 to vector<1x128xf32>
      %c0 = arith.constant 0 : index
      %c0_5 = arith.constant 0 : index
      %13 = vector.load %arg8[%c0, %c0_5] : memref<1x128xf32, #tpu.memory_space<vmem>>, vector<1x128xf32>
      tpu.vector_store %arg8[%c0, %c0_5], %12 {strides = array<i32>} : memref<1x128xf32, #tpu.memory_space<vmem>>, vector<1x128xf32>,
    } else {
    }
    %3 = arith.index_cast %arg0 : i32 to index
    %4 = arith.index_cast %arg1 : i32 to index
    %5 = memref.load %arg2[%3, %4] : memref<1x1xi32, #tpu.memory_space<smem>>
    %c0_i32_1 = arith.constant 0 : i32
    %6 = arith.cmpi sgt, %5, %c0_i32_1 : i32
    %7 = arith.extui %6 : i1 to i32
    %c0_i32_2 = arith.constant 0 : i32
    %8 = arith.cmpi ne, %7, %c0_i32_2 : i32
    scf.if %8 {
      %c0 = arith.constant 0 : index
      %c0_5 = arith.constant 0 : index
      %12 = vector.load %arg4[%c0, %c0_5] : memref<32x128xf32, #tpu.memory_space<vmem>>, vector<32x128xf32>
      %c0_6 = arith.constant 0 : index
      %c0_7 = arith.constant 0 : index
      %13 = vector.load %arg6[%c0_6, %c0_7] : memref<1x128xf32, #tpu.memory_space<vmem>>, vector<1x128xf32>
      %cst = arith.constant 0.000000e+00 : f32
      %14 = vector.broadcast %cst : f32 to vector<1x128xf32>
      %c0_8 = arith.constant 0 : index
      %c0_9 = arith.constant 0 : index
      %15 = vector.load %arg3[%c0_8, %c0_9] : memref<32x32xf32, #tpu.memory_space<vmem>>, vector<32x32xf32>
      %c0_10 = arith.constant 0 : index
      %c0_11 = arith.constant 0 : index
      %16 = vector.load %arg5[%c0_10, %c0_11] : memref<32x1xf32, #tpu.memory_space<vmem>>, vector<32x1xf32>
      %c0_12 = arith.constant 0 : index
      %c0_13 = arith.constant 0 : index
      %17 = vector.load %arg7[%c0_12, %c0_13] : memref<32x128xi8, #tpu.memory_space<vmem>>, vector<32x128xi8>
      %cst_14 = arith.constant 0.000000e+00 : f32
      %18 = vector.broadcast %cst_14 : f32 to vector<32x128xf32>
      %19 = vector.extract_strided_slice %15 {offsets = [0, 0], sizes = [32, 1], strides = [1, 1]} : vector<32x32xf32> to vector<32x1xf32>
      %20 = vector.extract_strided_slice %12 {offsets = [0, 0], sizes = [1, 128], strides = [1, 1]} : vector<32x128xf32> to vector<1x128xf32>
      %21 = vector.broadcast %19 : vector<32x1xf32> to vector<32x128xf32>
      %22 = vector.broadcast %20 : vector<1x128xf32> to vector<32x128xf32>
      %23 = arith.minimumf %21, %22 : vector<32x128xf32>
      %24 = arith.addf %18, %23 : vector<32x128xf32>
      %25 = vector.extract_strided_slice %15 {offsets = [0, 1], sizes = [32, 1], strides = [1, 1]} : vector<32x32xf32> to vector<32x1xf32>
      %26 = vector.extract_strided_slice %12 {offsets = [1, 0], sizes = [1, 128], strides = [1, 1]} : vector<32x128xf32> to vector<1x128xf32>
      %27 = vector.broadcast %25 : vector<32x1xf32> to vector<32x128xf32>
      %28 = vector.broadcast %26 : vector<1x128xf32> to vector<32x128xf32>
      %29 = arith.minimumf %27, %28 : vector<32x128xf32>
      %30 = arith.addf %24, %29 : vector<32x128xf32>
      %31 = vector.extract_strided_slice %15 {offsets = [0, 2], sizes = [32, 1], strides = [1, 1]} : vector<32x32xf32> to vector<32x1xf32>
      %32 = vector.extract_strided_slice %12 {offsets = [2, 0], sizes = [1, 128], strides = [1, 1]} : vector<32x128xf32> to vector<1x128xf32>
      %33 = vector.broadcast %31 : vector<32x1xf32> to vector<32x128xf32>
      %34 = vector.broadcast %32 : vector<1x128xf32> to vector<32x128xf32>
      %35 = arith.minimumf %33, %34 : vector<32x128xf32>
      %36 = arith.addf %30, %35 : vector<32x128xf32>
      %37 = vector.extract_strided_slice %15 {offsets = [0, 3], sizes = [32, 1], strides = [1, 1]} : vector<32x32xf32> to vector<32x1xf32>
      %38 = vector.extract_strided_slice %12 {offsets = [3, 0], sizes = [1, 128], strides = [1, 1]} : vector<32x128xf32> to vector<1x128xf32>
      %39 = vector.broadcast %37 : vector<32x1xf32> to vector<32x128xf32>
      %40 = vector.broadcast %38 : vector<1x128xf32> to vector<32x128xf32>
      %41 = arith.minimumf %39, %40 : vector<32x128xf32>
      %42 = arith.addf %36, %41 : vector<32x128xf32>
      %43 = vector.extract_strided_slice %15 {offsets = [0, 4], sizes = [32, 1], strides = [1, 1]} : vector<32x32xf32> to vector<32x1xf32>
      %44 = vector.extract_strided_slice %12 {offsets = [4, 0], sizes = [1, 128], strides = [1, 1]} : vector<32x128xf32> to vector<1x128xf32>
      %45 = vector.broadcast %43 : vector<32x1xf32> to vector<32x128xf32>
      %46 = vector.broadcast %44 : vector<1x128xf32> to vector<32x128xf32>
      %47 = arith.minimumf %45, %46 : vector<32x128xf32>
      %48 = arith.addf %42, %47 : vector<32x128xf32>
      %49 = vector.extract_strided_slice %15 {offsets = [0, 5], sizes = [32, 1], strides = [1, 1]} : vector<32x32xf32> to vector<32x1xf32>
      %50 = vector.extract_strided_slice %12 {offsets = [5, 0], sizes = [1, 128], strides = [1, 1]} : vector<32x128xf32> to vector<1x128xf32>
      %51 = vector.broadcast %49 : vector<32x1xf32> to vector<32x128xf32>
      %52 = vector.broadcast %50 : vector<1x128xf32> to vector<32x128xf32>
      %53 = arith.minimumf %51, %52 : vector<32x128xf32>
      %54 = arith.addf %48, %53 : vector<32x128xf32>
      %55 = vector.extract_strided_slice %15 {offsets = [0, 6], sizes = [32, 1], strides = [1, 1]} : vector<32x32xf32> to vector<32x1xf32>
      %56 = vector.extract_strided_slice %12 {offsets = [6, 0], sizes = [1, 128], strides = [1, 1]} : vector<32x128xf32> to vector<1x128xf32>
      %57 = vector.broadcast %55 : vector<32x1xf32> to vector<32x128xf32>
      %58 = vector.broadcast %56 : vector<1x128xf32> to vector<32x128xf32>
      %59 = arith.minimumf %57, %58 : vector<32x128xf32>
      %60 = arith.addf %54, %59 : vector<32x128xf32>
      %61 = vector.extract_strided_slice %15 {offsets = [0, 7], sizes = [32, 1], strides = [1, 1]} : vector<32x32xf32> to vector<32x1xf32>
      %62 = vector.extract_strided_slice %12 {offsets = [7, 0], sizes = [1, 128], strides = [1, 1]} : vector<32x128xf32> to vector<1x128xf32>
      %63 = vector.broadcast %61 : vector<32x1xf32> to vector<32x128xf32>
      %64 = vector.broadcast %62 : vector<1x128xf32> to vector<32x128xf32>
      %65 = arith.minimumf %63, %64 : vector<32x128xf32>
      %66 = arith.addf %60, %65 : vector<32x128xf32>
      %67 = vector.extract_strided_slice %15 {offsets = [0, 8], sizes = [32, 1], strides = [1, 1]} : vector<32x32xf32> to vector<32x1xf32>
      %68 = vector.extract_strided_slice %12 {offsets = [8, 0], sizes = [1, 128], strides = [1, 1]} : vector<32x128xf32> to vector<1x128xf32>
      %69 = vector.broadcast %67 : vector<32x1xf32> to vector<32x128xf32>
      %70 = vector.broadcast %68 : vector<1x128xf32> to vector<32x128xf32>
      %71 = arith.minimumf %69, %70 : vector<32x128xf32>
      %72 = arith.addf %66, %71 : vector<32x128xf32>
      %73 = vector.extract_strided_slice %15 {offsets = [0, 9], sizes = [32, 1], strides = [1, 1]} : vector<32x32xf32> to vector<32x1xf32>
      %74 = vector.extract_strided_slice %12 {offsets = [9, 0], sizes = [1, 128], strides = [1, 1]} : vector<32x128xf32> to vector<1x128xf32>
      %75 = vector.broadcast %73 : vector<32x1xf32> to vector<32x128xf32>
      %76 = vector.broadcast %74 : vector<1x128xf32> to vector<32x128xf32>
      %77 = arith.minimumf %75, %76 : vector<32x128xf32>
      %78 = arith.addf %72, %77 : vector<32x128xf32>
      %79 = vector.extract_strided_slice %15 {offsets = [0, 10], sizes = [32, 1], strides = [1, 1]} : vector<32x32xf32> to vector<32x1xf32>
      %80 = vector.extract_strided_slice %12 {offsets = [10, 0], sizes = [1, 128], strides = [1, 1]} : vector<32x128xf32> to vector<1x128xf32>
      %81 = vector.broadcast %79 : vector<32x1xf32> to vector<32x128xf32>
      %82 = vector.broadcast %80 : vector<1x128xf32> to vector<32x128xf32>
      %83 = arith.minimumf %81, %82 : vector<32x128xf32>
      %84 = arith.addf %78, %83 : vector<32x128xf32>
      %85 = vector.extract_strided_slice %15 {offsets = [0, 11], sizes = [32, 1], strides = [1, 1]} : vector<32x32xf32> to vector<32x1xf32>
      %86 = vector.extract_strided_slice %12 {offsets = [11, 0], sizes = [1, 128], strides = [1, 1]} : vector<32x128xf32> to vector<1x128xf32>
      %87 = vector.broadcast %85 : vector<32x1xf32> to vector<32x128xf32>
      %88 = vector.broadcast %86 : vector<1x128xf32> to vector<32x128xf32>
      %89 = arith.minimumf %87, %88 : vector<32x128xf32>
      %90 = arith.addf %84, %89 : vector<32x128xf32>
      %91 = vector.extract_strided_slice %15 {offsets = [0, 12], sizes = [32, 1], strides = [1, 1]} : vector<32x32xf32> to vector<32x1xf32>
      %92 = vector.extract_strided_slice %12 {offsets = [12, 0], sizes = [1, 128], strides = [1, 1]} : vector<32x128xf32> to vector<1x128xf32>
      %93 = vector.broadcast %91 : vector<32x1xf32> to vector<32x128xf32>
      %94 = vector.broadcast %92 : vector<1x128xf32> to vector<32x128xf32>
      %95 = arith.minimumf %93, %94 : vector<32x128xf32>
      %96 = arith.addf %90, %95 : vector<32x128xf32>
      %97 = vector.extract_strided_slice %15 {offsets = [0, 13], sizes = [32, 1], strides = [1, 1]} : vector<32x32xf32> to vector<32x1xf32>
      %98 = vector.extract_strided_slice %12 {offsets = [13, 0], sizes = [1, 128], strides = [1, 1]} : vector<32x128xf32> to vector<1x128xf32>
      %99 = vector.broadcast %97 : vector<32x1xf32> to vector<32x128xf32>
      %100 = vector.broadcast %98 : vector<1x128xf32> to vector<32x128xf32>
      %101 = arith.minimumf %99, %100 : vector<32x128xf32>
      %102 = arith.addf %96, %101 : vector<32x128xf32>
      %103 = vector.extract_strided_slice %15 {offsets = [0, 14], sizes = [32, 1], strides = [1, 1]} : vector<32x32xf32> to vector<32x1xf32>
      %104 = vector.extract_strided_slice %12 {offsets = [14, 0], sizes = [1, 128], strides = [1, 1]} : vector<32x128xf32> to vector<1x128xf32>
      %105 = vector.broadcast %103 : vector<32x1xf32> to vector<32x128xf32>
      %106 = vector.broadcast %104 : vector<1x128xf32> to vector<32x128xf32>
      %107 = arith.minimumf %105, %106 : vector<32x128xf32>
      %108 = arith.addf %102, %107 : vector<32x128xf32>
      %109 = vector.extract_strided_slice %15 {offsets = [0, 15], sizes = [32, 1], strides = [1, 1]} : vector<32x32xf32> to vector<32x1xf32>
      %110 = vector.extract_strided_slice %12 {offsets = [15, 0], sizes = [1, 128], strides = [1, 1]} : vector<32x128xf32> to vector<1x128xf32>
      %111 = vector.broadcast %109 : vector<32x1xf32> to vector<32x128xf32>
      %112 = vector.broadcast %110 : vector<1x128xf32> to vector<32x128xf32>
      %113 = arith.minimumf %111, %112 : vector<32x128xf32>
      %114 = arith.addf %108, %113 : vector<32x128xf32>
      %115 = vector.extract_strided_slice %15 {offsets = [0, 16], sizes = [32, 1], strides = [1, 1]} : vector<32x32xf32> to vector<32x1xf32>
      %116 = vector.extract_strided_slice %12 {offsets = [16, 0], sizes = [1, 128], strides = [1, 1]} : vector<32x128xf32> to vector<1x128xf32>
      %117 = vector.broadcast %115 : vector<32x1xf32> to vector<32x128xf32>
      %118 = vector.broadcast %116 : vector<1x128xf32> to vector<32x128xf32>
      %119 = arith.minimumf %117, %118 : vector<32x128xf32>
      %120 = arith.addf %114, %119 : vector<32x128xf32>
      %121 = vector.extract_strided_slice %15 {offsets = [0, 17], sizes = [32, 1], strides = [1, 1]} : vector<32x32xf32> to vector<32x1xf32>
      %122 = vector.extract_strided_slice %12 {offsets = [17, 0], sizes = [1, 128], strides = [1, 1]} : vector<32x128xf32> to vector<1x128xf32>
      %123 = vector.broadcast %121 : vector<32x1xf32> to vector<32x128xf32>
      %124 = vector.broadcast %122 : vector<1x128xf32> to vector<32x128xf32>
      %125 = arith.minimumf %123, %124 : vector<32x128xf32>
      %126 = arith.addf %120, %125 : vector<32x128xf32>
      %127 = vector.extract_strided_slice %15 {offsets = [0, 18], sizes = [32, 1], strides = [1, 1]} : vector<32x32xf32> to vector<32x1xf32>
      %128 = vector.extract_strided_slice %12 {offsets = [18, 0], sizes = [1, 128], strides = [1, 1]} : vector<32x128xf32> to vector<1x128xf32>
      %129 = vector.broadcast %127 : vector<32x1xf32> to vector<32x128xf32>
      %130 = vector.broadcast %128 : vector<1x128xf32> to vector<32x128xf32>
      %131 = arith.minimumf %129, %130 : vector<32x128xf32>
      %132 = arith.addf %126, %131 : vector<32x128xf32>
      %133 = vector.extract_strided_slice %15 {offsets = [0, 19], sizes = [32, 1], strides = [1, 1]} : vector<32x32xf32> to vector<32x1xf32>
      %134 = vector.extract_strided_slice %12 {offsets = [19, 0], sizes = [1, 128], strides = [1, 1]} : vector<32x128xf32> to vector<1x128xf32>
      %135 = vector.broadcast %133 : vector<32x1xf32> to vector<32x128xf32>
      %136 = vector.broadcast %134 : vector<1x128xf32> to vector<32x128xf32>
      %137 = arith.minimumf %135, %136 : vector<32x128xf32>
      %138 = arith.addf %132, %137 : vector<32x128xf32>
      %139 = vector.extract_strided_slice %15 {offsets = [0, 20], sizes = [32, 1], strides = [1, 1]} : vector<32x32xf32> to vector<32x1xf32>
      %140 = vector.extract_strided_slice %12 {offsets = [20, 0], sizes = [1, 128], strides = [1, 1]} : vector<32x128xf32> to vector<1x128xf32>
      %141 = vector.broadcast %139 : vector<32x1xf32> to vector<32x128xf32>
      %142 = vector.broadcast %140 : vector<1x128xf32> to vector<32x128xf32>
      %143 = arith.minimumf %141, %142 : vector<32x128xf32>
      %144 = arith.addf %138, %143 : vector<32x128xf32>
      %145 = vector.extract_strided_slice %15 {offsets = [0, 21], sizes = [32, 1], strides = [1, 1]} : vector<32x32xf32> to vector<32x1xf32>
      %146 = vector.extract_strided_slice %12 {offsets = [21, 0], sizes = [1, 128], strides = [1, 1]} : vector<32x128xf32> to vector<1x128xf32>
      %147 = vector.broadcast %145 : vector<32x1xf32> to vector<32x128xf32>
      %148 = vector.broadcast %146 : vector<1x128xf32> to vector<32x128xf32>
      %149 = arith.minimumf %147, %148 : vector<32x128xf32>
      %150 = arith.addf %144, %149 : vector<32x128xf32>
      %151 = vector.extract_strided_slice %15 {offsets = [0, 22], sizes = [32, 1], strides = [1, 1]} : vector<32x32xf32> to vector<32x1xf32>
      %152 = vector.extract_strided_slice %12 {offsets = [22, 0], sizes = [1, 128], strides = [1, 1]} : vector<32x128xf32> to vector<1x128xf32>
      %153 = vector.broadcast %151 : vector<32x1xf32> to vector<32x128xf32>
      %154 = vector.broadcast %152 : vector<1x128xf32> to vector<32x128xf32>
      %155 = arith.minimumf %153, %154 : vector<32x128xf32>
      %156 = arith.addf %150, %155 : vector<32x128xf32>
      %157 = vector.extract_strided_slice %15 {offsets = [0, 23], sizes = [32, 1], strides = [1, 1]} : vector<32x32xf32> to vector<32x1xf32>
      %158 = vector.extract_strided_slice %12 {offsets = [23, 0], sizes = [1, 128], strides = [1, 1]} : vector<32x128xf32> to vector<1x128xf32>
      %159 = vector.broadcast %157 : vector<32x1xf32> to vector<32x128xf32>
      %160 = vector.broadcast %158 : vector<1x128xf32> to vector<32x128xf32>
      %161 = arith.minimumf %159, %160 : vector<32x128xf32>
      %162 = arith.addf %156, %161 : vector<32x128xf32>
      %163 = vector.extract_strided_slice %15 {offsets = [0, 24], sizes = [32, 1], strides = [1, 1]} : vector<32x32xf32> to vector<32x1xf32>
      %164 = vector.extract_strided_slice %12 {offsets = [24, 0], sizes = [1, 128], strides = [1, 1]} : vector<32x128xf32> to vector<1x128xf32>
      %165 = vector.broadcast %163 : vector<32x1xf32> to vector<32x128xf32>
      %166 = vector.broadcast %164 : vector<1x128xf32> to vector<32x128xf32>
      %167 = arith.minimumf %165, %166 : vector<32x128xf32>
      %168 = arith.addf %162, %167 : vector<32x128xf32>
      %169 = vector.extract_strided_slice %15 {offsets = [0, 25], sizes = [32, 1], strides = [1, 1]} : vector<32x32xf32> to vector<32x1xf32>
      %170 = vector.extract_strided_slice %12 {offsets = [25, 0], sizes = [1, 128], strides = [1, 1]} : vector<32x128xf32> to vector<1x128xf32>
      %171 = vector.broadcast %169 : vector<32x1xf32> to vector<32x128xf32>
      %172 = vector.broadcast %170 : vector<1x128xf32> to vector<32x128xf32>
      %173 = arith.minimumf %171, %172 : vector<32x128xf32>
      %174 = arith.addf %168, %173 : vector<32x128xf32>
      %175 = vector.extract_strided_slice %15 {offsets = [0, 26], sizes = [32, 1], strides = [1, 1]} : vector<32x32xf32> to vector<32x1xf32>
      %176 = vector.extract_strided_slice %12 {offsets = [26, 0], sizes = [1, 128], strides = [1, 1]} : vector<32x128xf32> to vector<1x128xf32>
      %177 = vector.broadcast %175 : vector<32x1xf32> to vector<32x128xf32>
      %178 = vector.broadcast %176 : vector<1x128xf32> to vector<32x128xf32>
      %179 = arith.minimumf %177, %178 : vector<32x128xf32>
      %180 = arith.addf %174, %179 : vector<32x128xf32>
      %181 = vector.extract_strided_slice %15 {offsets = [0, 27], sizes = [32, 1], strides = [1, 1]} : vector<32x32xf32> to vector<32x1xf32>
      %182 = vector.extract_strided_slice %12 {offsets = [27, 0], sizes = [1, 128], strides = [1, 1]} : vector<32x128xf32> to vector<1x128xf32>
      %183 = vector.broadcast %181 : vector<32x1xf32> to vector<32x128xf32>
      %184 = vector.broadcast %182 : vector<1x128xf32> to vector<32x128xf32>
      %185 = arith.minimumf %183, %184 : vector<32x128xf32>
      %186 = arith.addf %180, %185 : vector<32x128xf32>
      %187 = vector.extract_strided_slice %15 {offsets = [0, 28], sizes = [32, 1], strides = [1, 1]} : vector<32x32xf32> to vector<32x1xf32>
      %188 = vector.extract_strided_slice %12 {offsets = [28, 0], sizes = [1, 128], strides = [1, 1]} : vector<32x128xf32> to vector<1x128xf32>
      %189 = vector.broadcast %187 : vector<32x1xf32> to vector<32x128xf32>
      %190 = vector.broadcast %188 : vector<1x128xf32> to vector<32x128xf32>
      %191 = arith.minimumf %189, %190 : vector<32x128xf32>
      %192 = arith.addf %186, %191 : vector<32x128xf32>
      %193 = vector.extract_strided_slice %15 {offsets = [0, 29], sizes = [32, 1], strides = [1, 1]} : vector<32x32xf32> to vector<32x1xf32>
      %194 = vector.extract_strided_slice %12 {offsets = [29, 0], sizes = [1, 128], strides = [1, 1]} : vector<32x128xf32> to vector<1x128xf32>
      %195 = vector.broadcast %193 : vector<32x1xf32> to vector<32x128xf32>
      %196 = vector.broadcast %194 : vector<1x128xf32> to vector<32x128xf32>
      %197 = arith.minimumf %195, %196 : vector<32x128xf32>
      %198 = arith.addf %192, %197 : vector<32x128xf32>
      %199 = vector.extract_strided_slice %15 {offsets = [0, 30], sizes = [32, 1], strides = [1, 1]} : vector<32x32xf32> to vector<32x1xf32>
      %200 = vector.extract_strided_slice %12 {offsets = [30, 0], sizes = [1, 128], strides = [1, 1]} : vector<32x128xf32> to vector<1x128xf32>
      %201 = vector.broadcast %199 : vector<32x1xf32> to vector<32x128xf32>
      %202 = vector.broadcast %200 : vector<1x128xf32> to vector<32x128xf32>
      %203 = arith.minimumf %201, %202 : vector<32x128xf32>
      %204 = arith.addf %198, %203 : vector<32x128xf32>
      %205 = vector.extract_strided_slice %15 {offsets = [0, 31], sizes = [32, 1], strides = [1, 1]} : vector<32x32xf32> to vector<32x1xf32>
      %206 = vector.extract_strided_slice %12 {offsets = [31, 0], sizes = [1, 128], strides = [1, 1]} : vector<32x128xf32> to vector<1x128xf32>
      %207 = vector.broadcast %205 : vector<32x1xf32> to vector<32x128xf32>
      %208 = vector.broadcast %206 : vector<1x128xf32> to vector<32x128xf32>
      %209 = arith.minimumf %207, %208 : vector<32x128xf32>
      %210 = arith.addf %204, %209 : vector<32x128xf32>
      %211 = vector.broadcast %16 : vector<32x1xf32> to vector<32x128xf32>
      %212 = vector.broadcast %13 : vector<1x128xf32> to vector<32x128xf32>
      %213 = arith.addf %211, %212 : vector<32x128xf32>
      %cst_15 = arith.constant 2.000000e+00 : f32
      %214 = vector.broadcast %cst_15 : f32 to vector<32x128xf32>
      %215 = arith.mulf %214, %210 : vector<32x128xf32>
      %216 = arith.subf %213, %215 : vector<32x128xf32>
      %cst_16 = arith.constant -0.00999999977 : f32
      %217 = vector.broadcast %cst_16 : f32 to vector<32x128xf32>
      %218 = arith.mulf %217, %216 : vector<32x128xf32>
      %219 = math.exp %218 : vector<32x128xf32>
      %c0_i8 = arith.constant 0 : i8
      %220 = vector.broadcast %c0_i8 : i8 to vector<32x128xi8>
      %221 = arith.cmpi ne, %17, %220 : vector<32x128xi8>
      %222 = math.exp %219 : vector<32x128xf32>
      %cst_17 = arith.constant 0.000000e+00 : f32
      %223 = vector.broadcast %cst_17 : f32 to vector<32x128xf32>
      %224 = arith.select %221, %222, %223 : vector<32x128xi1>, vector<32x128xf32>
      %cst_18 = arith.constant dense<0.000000e+00> : vector<128xf32>
      %225 = vector.multi_reduction <add>, %224, %cst_18 [0] : vector<32x128xf32> to vector<128xf32>
      %226 = vector.shape_cast %225 : vector<128xf32> to vector<1x128xf32>
      %227 = arith.addf %14, %226 : vector<1x128xf32>
      %c0_19 = arith.constant 0 : index
      %c0_20 = arith.constant 0 : index
      %228 = vector.load %arg8[%c0_19, %c0_20] : memref<1x128xf32, #tpu.memory_space<vmem>>, vector<1x128xf32>
      %229 = arith.addf %228, %227 : vector<1x128xf32>
      %c0_21 = arith.constant 0 : index
      %c0_22 = arith.constant 0 : index
      %230 = vector.load %arg8[%c0_21, %c0_22] : memref<1x128xf32, #tpu.memory_space<vmem>>, vector<1x128xf32>
      tpu.vector_store %arg8[%c0_21, %c0_22], %229 {strides = array<i32>} : memref<1x128xf32, #tpu.memory_space<vmem>>, vector<1x128xf32>,
    } else {
    }
    %c0_i32_3 = arith.constant 0 : i32
    %9 = arith.cmpi eq, %arg1, %c0_i32_3 : i32
    %10 = arith.extui %9 : i1 to i32
    %c0_i32_4 = arith.constant 0 : i32
    %11 = arith.cmpi ne, %10, %c0_i32_4 : i32
    scf.if %11 {
      %c0 = arith.constant 0 : index
      %c0_5 = arith.constant 0 : index
      %12 = vector.load %arg8[%c0, %c0_5] : memref<1x128xf32, #tpu.memory_space<vmem>>, vector<1x128xf32>
      %cst = arith.constant 0.000000e+00 : f32
      %13 = vector.broadcast %cst : f32 to vector<1x128xf32>
      %14 = arith.cmpf ogt, %12, %13 : vector<1x128xf32>
      %cst_6 = arith.constant 1.000000e+00 : f32
      %15 = vector.broadcast %cst_6 : f32 to vector<1x128xf32>
      %16 = arith.select %14, %12, %15 : vector<1x128xi1>, vector<1x128xf32>
      %17 = tpu.reciprocal %16 {approx = true} : vector<1x128xf32> -> vector<1x128xf32>
      %18 = arith.mulf %16, %17 : vector<1x128xf32>
      %cst_7 = arith.constant 2.000000e+00 : f32
      %19 = vector.broadcast %cst_7 : f32 to vector<1x128xf32>
      %20 = arith.subf %19, %18 : vector<1x128xf32>
      %21 = arith.mulf %17, %20 : vector<1x128xf32>
      %cst_8 = arith.constant 0.000000e+00 : f32
      %22 = vector.broadcast %cst_8 : f32 to vector<1x128xf32>
      %23 = arith.cmpf ogt, %12, %22 : vector<1x128xf32>
      %cst_9 = arith.constant 0.000000e+00 : f32
      %24 = vector.broadcast %cst_9 : f32 to vector<1x128xf32>
      %25 = arith.select %23, %21, %24 : vector<1x128xi1>, vector<1x128xf32>
      %c0_10 = arith.constant 0 : index
      %c0_11 = arith.constant 0 : index
      %26 = vector.load %arg8[%c0_10, %c0_11] : memref<1x128xf32, #tpu.memory_space<vmem>>, vector<1x128xf32>
      tpu.vector_store %arg8[%c0_10, %c0_11], %25 {strides = array<i32>} : memref<1x128xf32, #tpu.memory_space<vmem>>, vector<1x128xf32>,
    } else {
    }
    return
  }
  func.func @transform_0(%arg0: i32, %arg1: i32, %arg2: memref<1x1xi32, #tpu.memory_space<smem>>) -> (i32, i32) {
    %c0_i32 = arith.constant 0 : i32
    %c0_i32_0 = arith.constant 0 : i32
    return %arg1, %c0_i32 : i32, i32
  }
  func.func @transform_1(%arg0: i32, %arg1: i32, %arg2: memref<1x1xi32, #tpu.memory_space<smem>>) -> (i32, i32) {
    %c0_i32 = arith.constant 0 : i32
    %c0_i32_0 = arith.constant 0 : i32
    return %c0_i32, %arg0 : i32, i32
  }
  func.func @transform_2(%arg0: i32, %arg1: i32, %arg2: memref<1x1xi32, #tpu.memory_space<smem>>) -> (i32, i32) {
    %c0_i32 = arith.constant 0 : i32
    %c0_i32_0 = arith.constant 0 : i32
    return %arg1, %c0_i32 : i32, i32
  }
  func.func @transform_3(%arg0: i32, %arg1: i32, %arg2: memref<1x1xi32, #tpu.memory_space<smem>>) -> (i32, i32) {
    %c0_i32 = arith.constant 0 : i32
    %c0_i32_0 = arith.constant 0 : i32
    return %c0_i32, %arg0 : i32, i32
  }
  func.func @transform_4(%arg0: i32, %arg1: i32, %arg2: memref<1x1xi32, #tpu.memory_space<smem>>) -> (i32, i32) {
    %c0_i32 = arith.constant 0 : i32
    return %arg1, %arg0 : i32, i32
  }
  func.func @transform_5(%arg0: i32, %arg1: i32, %arg2: memref<1x1xi32, #tpu.memory_space<smem>>) -> (i32, i32) {
    %c0_i32 = arith.constant 0 : i32
    %c0_i32_0 = arith.constant 0 : i32
    return %c0_i32, %arg0 : i32, i32
  }
}

</mosaic_0001>

<bundles_post_ra>
// kernel: tpu_custom_call.1
= control target key start
LH: loop header
LB: loop body
LE: loop exit
PB: predicated region body
PF: predicated region fallthrough
CT: control target
= control target key end

     0   :  { %12 = vsyncpa [#allocation5], 0  ;;  %s1893_s0 = inlined_call_operand.<no memory space> [shape: s32[1,1], index: 0, kind: input, shape index: {}]   ;;  %s1894_s1 = inlined_call_operand.vmem [shape: f32[32,32], index: 1, kind: input, shape index: {}]   ;;  %s1895_s2 = inlined_call_operand.hbm [shape: f32[32,128], index: 2, kind: input, shape index: {}]   ;;  %s1896_s3 = inlined_call_operand.vmem [shape: f32[32,1], index: 3, kind: input, shape index: {}]   ;;  %s1897_s4 = inlined_call_operand.vmem [shape: f32[1,128], index: 4, kind: input, shape index: {}]   ;;  %s1898_s5 = inlined_call_operand.vmem [shape: s8[32,128], index: 5, kind: input, shape index: {}]   ;;  %s1899_s6 = inlined_call_operand.hbm [shape: f32[1,128], index: 6, kind: output, shape index: {}]  }
   0x1   :  { %13 = vsyncpa [#allocation6], 0  ;;  %s1281_s21 = smov [#allocation4]   ;;  %s1233_s25 = scalar_lea.hbm %s1895_s2, 512 }
   0x2   :  { %s21_s22 = sshll.u32 %s1281_s21, 4  ;;  %p1234_p0 = scmp.ne.s32.totalorder %s1895_s2, %s1233_s25  ;;  %s22_s22 = int_to_ptr.vmem [resolvable:$true] %s21_s22 }
   0x3   :  { %p1237_p1 = scmp.lt.u32.totalorder %s1233_s25, %s1895_s2 }
   0x5   :  { %p1239_p2 = pnand %p1237_p1, %p1234_p0 }
   0x7   :  { %1242 = shalt.err (!%p1239_p2)
}
   0x8   :  { %s1243_s30 = scalar_lea.vmem %s22_s22, 512  ;;  %p1248_p4 = scmp.lt.s32.totalorder %s22_s22, %s22_s22 }
   0x9   :  { %p1244_p3 = scmp.ne.s32.totalorder %s22_s22, %s1243_s30  ;;  %p1249_p5 = scmp.lt.s32.totalorder %s1243_s30, %s1243_s30 }
   0xb   :  { %p1250_p6 = por %p1249_p5, %p1248_p4 }
   0xd   :  { %p1251_p7 = pnand %p1250_p6, %p1244_p3 }
   0xf   :  { %1254 = shalt.err (!%p1251_p7)
}
  0x10   :  { %s1282_s7 = smov 128   ;;  %s1283_s8 = smov 8  }
  0x11   :  { %27 = dma.hbm_to_vmem [thread:$0]  %s1895_s2, 512, %s22_s22, [#allocation5], %s1282_s7, %s1282_s7, %s1283_s8  }
  0x12   :  { %1277 = dma.done.wait [#allocation5], 512  }
  0x13   :  { %1278 = vsyncadd [#allocation5], 4294966784  ;;  %v1284_v0 = vmov 0.0   ;;  %p1098_p8 = scmp.le.s32.totalorder %s1893_s0, 0 }
  0x14   :  { %43 = vst [vmem:[#allocation7] sm:$0x1] %v1284_v0  ;;  %v1371_v1 = vld [vmem:[%s1894_s1 + $0x10] sm:$0xff] (!%p1098_p8)  ;;  %v1376_v2 = vld [vmem:[%s1894_s1] sm:$0xff] (!%p1098_p8)  ;;  %v1285_v3 = vmov (!%p1098_p8), 0   ;;  %v1385_v4 = vld [vmem:[%s1894_s1 + $0x18] sm:$0xff] (!%p1098_p8)  ;;  %v86_v25 = vlaneseq (!%p1098_p8) }
  0x15   :  { %51 = sbr.rel (%p1098_p8) target bundleno = 567 (0x237), region = 33  ;;  %1138 = vset.pattern.permute.xlu1 (!%p1098_p8), %v1285_v3  ;;  %1137 = vset.pattern.permute.xlu0 (!%p1098_p8), %v1285_v3  ;;  %v1390_v5 = vld [vmem:[%s1894_s1 + $0x8] sm:$0xff] (!%p1098_p8)  ;;  %v1286_v6 = vmov (!%p1098_p8), 1   ;;  %v1287_v7 = vmov (!%p1098_p8), 2   ;;  %v1288_v8 = vmov (!%p1098_p8), 3   ;;  %v1289_v9 = vmov (!%p1098_p8), 4  }
  0x16   :  { %78 = vperm.xlu1 (!%p1098_p8), %1138, %v1371_v1   ;;  %68 = vperm.xlu0 (!%p1098_p8), %1137, %v1376_v2   ;;  %v1290_v10 = vmov (!%p1098_p8), 5   ;;  %v1291_v11 = vmov (!%p1098_p8), 6   ;;  %v1292_v12 = vmov (!%p1098_p8), 7   ;;  %v1293_v13 = vmov (!%p1098_p8), 8   ;;  %v1468_v35 = vld [vmem:[#allocation4] sm:$0xff] (!%p1098_p8) }
  0x17   :  { %v1294_v14 = vmov (!%p1098_p8), 9   ;;  %v1295_v15 = vmov (!%p1098_p8), 10   ;;  %v1296_v16 = vmov (!%p1098_p8), 11   ;;  %v1297_v17 = vmov (!%p1098_p8), 12  }
  0x18   :  { %v1298_v18 = vmov (!%p1098_p8), 13   ;;  %v1299_v19 = vmov (!%p1098_p8), 14   ;;  %v1300_v20 = vmov (!%p1098_p8), 15   ;;  %v1301_v21 = vmov (!%p1098_p8), 16  }
  0x19   :  { %v1302_v22 = vmov (!%p1098_p8), 17   ;;  %v1303_v26 = vmov (!%p1098_p8), 18   ;;  %v1456_v29 = vshrl.u32 (!%p1098_p8), %v86_v25, 7  ;;  %v1304_v31 = vmov (!%p1098_p8), 19  }
  0x1a   :  { %83 = vperm.xlu1 (!%p1098_p8), %1138, %v1385_v4   ;;  %73 = vperm.xlu0 (!%p1098_p8), %1137, %v1390_v5   ;;  %v1305_v47 = vmov (!%p1098_p8), 20   ;;  %v1306_v56 = vmov (!%p1098_p8), 21  }
  0x1b   :  { %v1460_v30 = vsub.s32 (!%p1098_p8), 1, %v1456_v29  ;;  %v1465_v32 = vsub.s32 (!%p1098_p8), 0, %v1456_v29  ;;  %v1475_v37 = vsub.s32 (!%p1098_p8), 2, %v1456_v29  ;;  %v1494_v46 = vsub.s32 (!%p1098_p8), 3, %v1456_v29 }
  0x1c   :  { %v1515_v63 = vsub.s32 4, %v1456_v29 }
  0x1d   :  { %v1472_v36 = vrot.slane %v1468_v35, %v1460_v30  ;;  %v1480_v38 = vrot.slane %v1468_v35, %v1465_v32  ;;  %v1489_v43 = vrot.slane %v1468_v35, %v1475_v37  ;;  %v1503_v54 = vrot.slane %v1468_v35, %v1494_v46 }
  0x1e   :  { %1140 = vset.pattern.permute.xlu1 %v1286_v6  ;;  %1139 = vset.pattern.permute.xlu0 %v1286_v6 }
  0x1f   :  { %103 = vperm.xlu1 %1140, %v1390_v5   ;;  %99 = vperm.xlu0 %1139, %v1376_v2  }
  0x23   :  { %107 = vperm.xlu1 %1140, %v1371_v1   ;;  %111 = vperm.xlu0 %1139, %v1385_v4  }
  0x27   :  { %1141 = vset.pattern.permute.xlu1 %v1287_v7  ;;  %1142 = vset.pattern.permute.xlu0 %v1287_v7 }
  0x28   :  { %127 = vperm.xlu1 %1141, %v1376_v2   ;;  %131 = vperm.xlu0 %1142, %v1390_v5  }
  0x2c   :  { %135 = vperm.xlu1 %1141, %v1371_v1   ;;  %1143 = vset.pattern.permute.xlu0 %v1288_v8 }
  0x2d   :  { %155 = vperm.xlu0 %1143, %v1376_v2  }
  0x30   :  { %139 = vperm.xlu1 %1141, %v1385_v4  }
  0x31   :  { %167 = vperm.xlu0 %1143, %v1385_v4  }
  0x34   :  { %1144 = vset.pattern.permute.xlu1 %v1288_v8 }
  0x35   :  { %159 = vperm.xlu1 %1144, %v1390_v5   ;;  %1146 = vset.pattern.permute.xlu0 %v1289_v9 }
  0x36   :  { %187 = vperm.xlu0 %1146, %v1390_v5  }
  0x39   :  { %163 = vperm.xlu1 %1144, %v1371_v1  }
  0x3a   :  { %1147 = vset.pattern.permute.xlu0 %v1290_v10 }
  0x3b   :  { %211 = vperm.xlu0 %1147, %v1376_v2  }
  0x3d   :  { %1145 = vset.pattern.permute.xlu1 %v1289_v9 }
  0x3e   :  { %183 = vperm.xlu1 %1145, %v1376_v2  }
  0x3f   :  { %223 = vperm.xlu0 %1147, %v1385_v4  }
  0x42   :  { %191 = vperm.xlu1 %1145, %v1371_v1  }
  0x43   :  { %1150 = vset.pattern.permute.xlu0 %v1291_v11 }
  0x44   :  { %243 = vperm.xlu0 %1150, %v1390_v5  }
  0x46   :  { %195 = vperm.xlu1 %1145, %v1385_v4  }
  0x48   :  { %1151 = vset.pattern.permute.xlu0 %v1292_v12 }
  0x49   :  { %267 = vperm.xlu0 %1151, %v1376_v2  }
  0x4a   :  { %1148 = vset.pattern.permute.xlu1 %v1290_v10 }
  0x4b   :  { %215 = vperm.xlu1 %1148, %v1390_v5  }
  0x4d   :  { %279 = vperm.xlu0 %1151, %v1385_v4  }
  0x4f   :  { %219 = vperm.xlu1 %1148, %v1371_v1  }
  0x51   :  { %1154 = vset.pattern.permute.xlu0 %v1293_v13 }
  0x52   :  { %299 = vperm.xlu0 %1154, %v1390_v5  }
  0x53   :  { %1149 = vset.pattern.permute.xlu1 %v1291_v11 }
  0x54   :  { %239 = vperm.xlu1 %1149, %v1376_v2  }
  0x56   :  { %1155 = vset.pattern.permute.xlu0 %v1294_v14 }
  0x57   :  { %323 = vperm.xlu0 %1155, %v1376_v2  }
  0x58   :  { %247 = vperm.xlu1 %1149, %v1371_v1  }
  0x5b   :  { %335 = vperm.xlu0 %1155, %v1385_v4  }
  0x5c   :  { %251 = vperm.xlu1 %1149, %v1385_v4  }
  0x5f   :  { %1158 = vset.pattern.permute.xlu0 %v1295_v15 }
  0x60   :  { %1152 = vset.pattern.permute.xlu1 %v1292_v12  ;;  %355 = vperm.xlu0 %1158, %v1390_v5   ;;  %v1523_v12 = vrot.slane %v1468_v35, %v1515_v63 }
  0x61   :  { %271 = vperm.xlu1 %1152, %v1390_v5  }
  0x64   :  { %1159 = vset.pattern.permute.xlu0 %v1296_v16 }
  0x65   :  { %275 = vperm.xlu1 %1152, %v1371_v1   ;;  %379 = vperm.xlu0 %1159, %v1376_v2  }
  0x69   :  { %1153 = vset.pattern.permute.xlu1 %v1293_v13  ;;  %391 = vperm.xlu0 %1159, %v1385_v4   ;;  %v1307_v13 = vmov 22  }
  0x6a   :  { %295 = vperm.xlu1 %1153, %v1376_v2  }
  0x6d   :  { %1162 = vset.pattern.permute.xlu0 %v1297_v17 }
  0x6e   :  { %303 = vperm.xlu1 %1153, %v1371_v1   ;;  %411 = vperm.xlu0 %1162, %v1390_v5  }
  0x72   :  { %307 = vperm.xlu1 %1153, %v1385_v4   ;;  %1163 = vset.pattern.permute.xlu0 %v1298_v18 }
  0x73   :  { %435 = vperm.xlu0 %1163, %v1376_v2  }
  0x76   :  { %1156 = vset.pattern.permute.xlu1 %v1294_v14 }
  0x77   :  { %327 = vperm.xlu1 %1156, %v1390_v5   ;;  %447 = vperm.xlu0 %1163, %v1385_v4  }
  0x7b   :  { %331 = vperm.xlu1 %1156, %v1371_v1   ;;  %1166 = vset.pattern.permute.xlu0 %v1299_v19 }
  0x7c   :  { %467 = vperm.xlu0 %1166, %v1390_v5  }
  0x7f   :  { %1157 = vset.pattern.permute.xlu1 %v1295_v15 }
  0x80   :  { %351 = vperm.xlu1 %1157, %v1376_v2   ;;  %1167 = vset.pattern.permute.xlu0 %v1300_v20 }
  0x81   :  { %491 = vperm.xlu0 %1167, %v1376_v2  }
  0x84   :  { %359 = vperm.xlu1 %1157, %v1371_v1  }
  0x85   :  { %503 = vperm.xlu0 %1167, %v1385_v4  }
  0x88   :  { %363 = vperm.xlu1 %1157, %v1385_v4  }
  0x89   :  { %1170 = vset.pattern.permute.xlu0 %v1301_v21 }
  0x8a   :  { %523 = vperm.xlu0 %1170, %v1390_v5  }
  0x8c   :  { %1160 = vset.pattern.permute.xlu1 %v1296_v16 }
  0x8d   :  { %383 = vperm.xlu1 %1160, %v1390_v5  }
  0x8e   :  { %1171 = vset.pattern.permute.xlu0 %v1302_v22 }
  0x8f   :  { %547 = vperm.xlu0 %1171, %v1376_v2  }
  0x91   :  { %387 = vperm.xlu1 %1160, %v1371_v1  }
  0x93   :  { %559 = vperm.xlu0 %1171, %v1385_v4  }
  0x95   :  { %v1451_v23 = vpop.permute.xlu1 %78  ;;  %1161 = vset.pattern.permute.xlu1 %v1297_v17  ;;  %v69_v24 = vpop.permute.xlu0 %68 }
  0x96   :  { %407 = vperm.xlu1 %1161, %v1376_v2   ;;  %v90_v44 = vmin.f32 %v69_v24, %v1480_v38 }
  0x97   :  { %1174 = vset.pattern.permute.xlu0 %v1303_v26 }
  0x98   :  { %579 = vperm.xlu0 %1174, %v1390_v5  }
  0x99   :  { %v84_v27 = vpop.permute.xlu1 %83  ;;  %v74_v28 = vpop.permute.xlu0 %73 }
  0x9a   :  { %415 = vperm.xlu1 %1161, %v1371_v1   ;;  %v91_v41 = vmin.f32 %v74_v28, %v1480_v38  ;;  %v93_v62 = vmin.f32 %v84_v27, %v1480_v38  ;;  %v1308_v27 = vmov 23  }
  0x9c   :  { %1175 = vset.pattern.permute.xlu0 %v1304_v31 }
  0x9d   :  { %603 = vperm.xlu0 %1175, %v1376_v2  }
  0x9e   :  { %v104_v33 = vpop.permute.xlu1 %103  ;;  %419 = vperm.xlu1 %1161, %v1385_v4   ;;  %v100_v34 = vpop.permute.xlu0 %99 }
  0x9f   :  { %v119_v42 = vmin.f32 %v104_v33, %v1472_v36  ;;  %v118_v45 = vmin.f32 %v100_v34, %v1472_v36 }
  0xa1   :  { %615 = vperm.xlu0 %1175, %v1385_v4   ;;  %v123_v50 = vadd.f32 %v119_v42, %v91_v41  ;;  %v122_v52 = vadd.f32 %v118_v45, %v90_v44  ;;  %v1309_v45 = vmov 24  }
  0xa2   :  { %v1482_v39 = vpop.permute.xlu1 %107  ;;  %1164 = vset.pattern.permute.xlu1 %v1298_v18  ;;  %v112_v40 = vpop.permute.xlu0 %111 }
  0xa3   :  { %439 = vperm.xlu1 %1164, %v1390_v5   ;;  %v121_v58 = vmin.f32 %v112_v40, %v1472_v36 }
  0xa5   :  { %1178 = vset.pattern.permute.xlu0 %v1305_v47  ;;  %v125_v7 = vadd.f32 %v121_v58, %v93_v62 }
  0xa6   :  { %635 = vperm.xlu0 %1178, %v1390_v5  }
  0xa7   :  { %443 = vperm.xlu1 %1164, %v1371_v1   ;;  %v128_v48 = vpop.permute.xlu1 %127  ;;  %v132_v49 = vpop.permute.xlu0 %131 }
  0xa8   :  { %v147_v51 = vmin.f32 %v132_v49, %v1489_v43  ;;  %v146_v53 = vmin.f32 %v128_v48, %v1489_v43 }
  0xaa   :  { %v151_v55 = vadd.f32 %v147_v51, %v123_v50  ;;  %1179 = vset.pattern.permute.xlu0 %v1306_v56  ;;  %v150_v60 = vadd.f32 %v146_v53, %v122_v52  ;;  %v1554_v50 = vsub.s32 6, %v1456_v29  ;;  %v1310_v53 = vmov 25  }
  0xab   :  { %1165 = vset.pattern.permute.xlu1 %v1299_v19  ;;  %v1507_v57 = vpop.permute.xlu1 %135  ;;  %659 = vperm.xlu0 %1179, %v1376_v2   ;;  %v1531_v19 = vsub.s32 5, %v1456_v29 }
  0xac   :  { %463 = vperm.xlu1 %1165, %v1376_v2   ;;  %v156_v59 = vpop.permute.xlu0 %155 }
  0xad   :  { %v174_v61 = vmin.f32 %v156_v59, %v1503_v54  ;;  %v1541_v33 = vrot.slane %v1468_v35, %v1531_v19 }
  0xaf   :  { %v178_v0 = vadd.f32 %v174_v61, %v150_v60  ;;  %v140_v6 = vpop.permute.xlu1 %139  ;;  %671 = vperm.xlu0 %1179, %v1385_v4  }
  0xb0   :  { %v149_v8 = vmin.f32 %v140_v6, %v1489_v43  ;;  %471 = vperm.xlu1 %1165, %v1371_v1   ;;  %v168_v9 = vpop.permute.xlu0 %167  ;;  %v1311_v6 = vmov 26  }
  0xb1   :  { %v177_v10 = vmin.f32 %v168_v9, %v1503_v54 }
  0xb2   :  { %v153_v11 = vadd.f32 %v149_v8, %v125_v7  ;;  %v1570_v7 = vsub.s32 7, %v1456_v29 }
  0xb3   :  { %1182 = vset.pattern.permute.xlu0 %v1307_v13 }
  0xb4   :  { %v181_v14 = vadd.f32 %v177_v10, %v153_v11  ;;  %475 = vperm.xlu1 %1165, %v1385_v4   ;;  %v160_v15 = vpop.permute.xlu1 %159  ;;  %691 = vperm.xlu0 %1182, %v1390_v5   ;;  %v1579_v11 = vrot.slane %v1468_v35, %v1570_v7 }
  0xb5   :  { %v175_v16 = vmin.f32 %v160_v15, %v1503_v54  ;;  %v188_v17 = vpop.permute.xlu0 %187 }
  0xb6   :  { %v203_v18 = vmin.f32 %v188_v17, %v1523_v12 }
  0xb7   :  { %v179_v24 = vadd.f32 %v175_v16, %v151_v55  ;;  %v1562_v55 = vrot.slane %v1468_v35, %v1554_v50 }
  0xb8   :  { %1168 = vset.pattern.permute.xlu1 %v1300_v20  ;;  %v1534_v25 = vpop.permute.xlu1 %163  ;;  %1183 = vset.pattern.permute.xlu0 %v1308_v27 }
  0xb9   :  { %v207_v28 = vadd.f32 %v203_v18, %v179_v24  ;;  %495 = vperm.xlu1 %1168, %v1390_v5   ;;  %715 = vperm.xlu0 %1183, %v1376_v2  }
  0xba   :  { %v212_v34 = vpop.permute.xlu0 %211 }
  0xbb   :  { %v230_v41 = vmin.f32 %v212_v34, %v1541_v33  ;;  %v1592_v34 = vld [vmem:[#allocation4 + $0x8] sm:$0xff] }
  0xbd   :  { %499 = vperm.xlu1 %1168, %v1371_v1   ;;  %v184_v40 = vpop.permute.xlu1 %183  ;;  %727 = vperm.xlu0 %1183, %v1385_v4  }
  0xbe   :  { %v202_v20 = vmin.f32 %v184_v40, %v1523_v12  ;;  %v224_v49 = vpop.permute.xlu0 %223 }
  0xc0   :  { %v206_v42 = vadd.f32 %v202_v20, %v178_v0 }
  0xc1   :  { %1169 = vset.pattern.permute.xlu1 %v1301_v21  ;;  %v1548_v44 = vpop.permute.xlu1 %191  ;;  %1186 = vset.pattern.permute.xlu0 %v1309_v45  ;;  %v233_v21 = vmin.f32 %v224_v49, %v1541_v33 }
  0xc2   :  { %v234_v48 = vadd.f32 %v230_v41, %v206_v42  ;;  %519 = vperm.xlu1 %1169, %v1376_v2   ;;  %747 = vperm.xlu0 %1186, %v1390_v5   ;;  %v1600_v41 = vrot.slane %v1592_v34, %v1465_v32 }
  0xc3   :  { %v244_v59 = vpop.permute.xlu0 %243 }
  0xc4   :  { %v259_v0 = vmin.f32 %v244_v59, %v1562_v55 }
  0xc5   :  { %v196_v51 = vpop.permute.xlu1 %195 }
  0xc6   :  { %v205_v52 = vmin.f32 %v196_v51, %v1523_v12  ;;  %527 = vperm.xlu1 %1169, %v1371_v1   ;;  %1188 = vset.pattern.permute.xlu0 %v1310_v53 }
  0xc7   :  { %775 = vperm.xlu0 %1188, %v1390_v5  }
  0xc8   :  { %v209_v58 = vadd.f32 %v205_v52, %v181_v14  ;;  %v268_v14 = vpop.permute.xlu0 %267 }
  0xc9   :  { %v286_v16 = vmin.f32 %v268_v14, %v1579_v11 }
  0xca   :  { %v237_v60 = vadd.f32 %v233_v21, %v209_v58  ;;  %531 = vperm.xlu1 %1169, %v1385_v4   ;;  %v216_v61 = vpop.permute.xlu1 %215  ;;  %v1314_v58 = vmov 29  }
  0xcb   :  { %v231_v62 = vmin.f32 %v216_v61, %v1541_v33  ;;  %1191 = vset.pattern.permute.xlu0 %v1311_v6 }
  0xcc   :  { %799 = vperm.xlu0 %1191, %v1376_v2   ;;  %v280_v24 = vpop.permute.xlu0 %279 }
  0xcd   :  { %v235_v8 = vadd.f32 %v231_v62, %v207_v28  ;;  %v1313_v28 = vmov 28   ;;  %v1614_v62 = vrot.slane %v1592_v34, %v1460_v30 }
  0xce   :  { %1172 = vset.pattern.permute.xlu1 %v1302_v22  ;;  %v1574_v9 = vpop.permute.xlu1 %219  ;;  %v1312_v22 = vmov 27  }
  0xcf   :  { %v263_v10 = vadd.f32 %v259_v0, %v235_v8  ;;  %551 = vperm.xlu1 %1172, %v1390_v5   ;;  %v1315_v8 = vmov 30  }
  0xd0   :  { %807 = vperm.xlu0 %1191, %v1371_v1  }
  0xd3   :  { %555 = vperm.xlu1 %1172, %v1371_v1   ;;  %v240_v29 = vpop.permute.xlu1 %239 }
  0xd4   :  { %v258_v15 = vmin.f32 %v240_v29, %v1562_v55  ;;  %1195 = vset.pattern.permute.xlu0 %v1312_v22 }
  0xd5   :  { %831 = vperm.xlu0 %1195, %v1390_v5  }
  0xd6   :  { %v262_v17 = vadd.f32 %v258_v15, %v234_v48  ;;  %v300_v48 = vpop.permute.xlu0 %299 }
  0xd7   :  { %1173 = vset.pattern.permute.xlu1 %v1303_v26  ;;  %v1588_v35 = vpop.permute.xlu1 %247  ;;  %v289_v26 = vmin.f32 %v280_v24, %v1579_v11  ;;  %v315_v21 = vmin.f32 %v300_v48, %v1600_v41  ;;  %v1316_v24 = vmov 31  }
  0xd8   :  { %v290_v18 = vadd.f32 %v286_v16, %v262_v17  ;;  %575 = vperm.xlu1 %1173, %v1376_v2  }
  0xd9   :  { %1198 = vset.pattern.permute.xlu0 %v1313_v28 }
  0xda   :  { %855 = vperm.xlu0 %1198, %v1376_v2   ;;  %v324_v0 = vpop.permute.xlu0 %323 }
  0xdb   :  { %v252_v40 = vpop.permute.xlu1 %251  ;;  %v342_v14 = vmin.f32 %v324_v0, %v1614_v62 }
  0xdc   :  { %v261_v20 = vmin.f32 %v252_v40, %v1562_v55  ;;  %583 = vperm.xlu1 %1173, %v1371_v1  }
  0xde   :  { %v265_v42 = vadd.f32 %v261_v20, %v237_v60  ;;  %863 = vperm.xlu0 %1198, %v1371_v1   ;;  %v336_v17 = vpop.permute.xlu0 %335 }
  0xe0   :  { %v293_v49 = vadd.f32 %v289_v26, %v265_v42  ;;  %587 = vperm.xlu1 %1173, %v1385_v4   ;;  %v272_v51 = vpop.permute.xlu1 %271 }
  0xe1   :  { %v287_v52 = vmin.f32 %v272_v51, %v1579_v11 }
  0xe2   :  { %1202 = vset.pattern.permute.xlu0 %v1314_v58  ;;  %v356_v42 = vpop.permute.xlu0 %355 }
  0xe3   :  { %v291_v59 = vadd.f32 %v287_v52, %v263_v10  ;;  %887 = vperm.xlu0 %1202, %v1390_v5  }
  0xe4   :  { %1176 = vset.pattern.permute.xlu1 %v1304_v31  ;;  %v1609_v60 = vpop.permute.xlu1 %275 }
  0xe5   :  { %v319_v61 = vadd.f32 %v315_v21, %v291_v59  ;;  %607 = vperm.xlu1 %1176, %v1390_v5   ;;  %v62_v59 = vld [vmem:[%s1896_s3 + $0x8] sm:$0xff] }
  0xe7   :  { %1205 = vset.pattern.permute.xlu0 %v1315_v8 }
  0xe8   :  { %911 = vperm.xlu0 %1205, %v1376_v2  }
  0xe9   :  { %611 = vperm.xlu1 %1176, %v1371_v1   ;;  %v296_v10 = vpop.permute.xlu1 %295 }
  0xea   :  { %v314_v31 = vmin.f32 %v296_v10, %v1600_v41 }
  0xec   :  { %v318_v29 = vadd.f32 %v314_v31, %v290_v18  ;;  %919 = vperm.xlu0 %1205, %v1371_v1   ;;  %v345_v18 = vmin.f32 %v336_v17, %v1614_v62  ;;  %v1649_v31 = vrot.slane %v1592_v34, %v1494_v46 }
  0xed   :  { %1177 = vset.pattern.permute.xlu1 %v1305_v47  ;;  %v1623_v15 = vpop.permute.xlu1 %303  ;;  %v1633_v47 = vrot.slane %v1592_v34, %v1475_v37 }
  0xee   :  { %v346_v16 = vadd.f32 %v342_v14, %v318_v29  ;;  %631 = vperm.xlu1 %1177, %v1376_v2   ;;  %v380_v14 = vpop.permute.xlu0 %379 }
  0xef   :  { %v371_v21 = vmin.f32 %v356_v42, %v1633_v47  ;;  %v398_v17 = vmin.f32 %v380_v14, %v1649_v31 }
  0xf0   :  { %1209 = vset.pattern.permute.xlu0 %v1316_v24 }
  0xf1   :  { %v308_v40 = vpop.permute.xlu1 %307  ;;  %943 = vperm.xlu0 %1209, %v1390_v5  }
  0xf2   :  { %v317_v20 = vmin.f32 %v308_v40, %v1600_v41  ;;  %639 = vperm.xlu1 %1177, %v1371_v1  }
  0xf4   :  { %v321_v26 = vadd.f32 %v317_v20, %v293_v49 }
  0xf5   :  { %951 = vperm.xlu0 %1209, %v1385_v4  }
  0xf6   :  { %v349_v48 = vadd.f32 %v345_v18, %v321_v26  ;;  %643 = vperm.xlu1 %1177, %v1385_v4   ;;  %v328_v51 = vpop.permute.xlu1 %327  ;;  %v392_v18 = vpop.permute.xlu0 %391 }
  0xf7   :  { %v343_v52 = vmin.f32 %v328_v51, %v1614_v62  ;;  %v401_v51 = vmin.f32 %v392_v18, %v1649_v31  ;;  %v120_v18 = vmin.f32 %v1482_v39, %v1472_v36 }
  0xf9   :  { %v347_v0 = vadd.f32 %v343_v52, %v319_v61  ;;  %1213 = vset.pattern.permute.xlu0 %v1285_v3  ;;  %v1663_v52 = vrot.slane %v1592_v34, %v1515_v63 }
  0xfa   :  { %1180 = vset.pattern.permute.xlu1 %v1306_v56  ;;  %v1644_v49 = vpop.permute.xlu1 %331  ;;  %973 = vperm.xlu0 %1213, %v62_v59  }
  0xfb   :  { %v375_v10 = vadd.f32 %v371_v21, %v347_v0  ;;  %663 = vperm.xlu1 %1180, %v1390_v5   ;;  %v412_v21 = vpop.permute.xlu0 %411 }
  0xfc   :  { %v427_v14 = vmin.f32 %v412_v21, %v1663_v52  ;;  %v176_v21 = vmin.f32 %v1534_v25, %v1503_v54  ;;  %v260_v54 = vmin.f32 %v1588_v35, %v1562_v55 }
  0xff   :  { %667 = vperm.xlu1 %1180, %v1371_v1   ;;  %v352_v29 = vpop.permute.xlu1 %351 }
 0x100   :  { %v370_v61 = vmin.f32 %v352_v29, %v1633_v47 }
 0x102   :  { %v374_v40 = vadd.f32 %v370_v61, %v346_v16 }
 0x103   :  { %1181 = vset.pattern.permute.xlu1 %v1307_v13  ;;  %v1655_v56 = vpop.permute.xlu1 %359 }
 0x104   :  { %v402_v20 = vadd.f32 %v398_v17, %v374_v40  ;;  %687 = vperm.xlu1 %1181, %v1376_v2   ;;  %v1672_v40 = vrot.slane %v1592_v34, %v1531_v19 }
 0x107   :  { %v364_v26 = vpop.permute.xlu1 %363 }
 0x108   :  { %v373_v42 = vmin.f32 %v364_v26, %v1633_v47  ;;  %695 = vperm.xlu1 %1181, %v1371_v1  }
 0x10a   :  { %v377_v16 = vadd.f32 %v373_v42, %v349_v48  ;;  %v436_v48 = vpop.permute.xlu0 %435 }
 0x10c   :  { %v405_v13 = vadd.f32 %v401_v51, %v377_v16  ;;  %699 = vperm.xlu1 %1181, %v1385_v4   ;;  %v384_v59 = vpop.permute.xlu1 %383  ;;  %v454_v51 = vmin.f32 %v436_v48, %v1672_v40  ;;  %v288_v48 = vmin.f32 %v1609_v60, %v1579_v11 }
 0x10d   :  { %v399_v0 = vmin.f32 %v384_v59, %v1649_v31 }
 0x10f   :  { %v403_v29 = vadd.f32 %v399_v0, %v375_v10  ;;  %v92_v10 = vmin.f32 %v1451_v23, %v1480_v38  ;;  %v204_v0 = vmin.f32 %v1548_v44, %v1523_v12  ;;  %v448_v38 = vpop.permute.xlu0 %447  ;;  %v481_v12 = vrot.slane %v1592_v34, %v1554_v50 }
 0x110   :  { %1184 = vset.pattern.permute.xlu1 %v1308_v27  ;;  %v388_v61 = vpop.permute.xlu1 %387  ;;  %v148_v27 = vmin.f32 %v1507_v57, %v1489_v43  ;;  %v232_v57 = vmin.f32 %v1574_v9, %v1541_v33 }
 0x111   :  { %v431_v17 = vadd.f32 %v427_v14, %v403_v29  ;;  %719 = vperm.xlu1 %1184, %v1390_v5   ;;  %v124_v16 = vadd.f32 %v120_v18, %v92_v10 }
 0x113   :  { %v152_v39 = vadd.f32 %v148_v27, %v124_v16  ;;  %v468_v33 = vpop.permute.xlu0 %467 }
 0x114   :  { %v483_v27 = vmin.f32 %v468_v33, %v481_v12 }
 0x115   :  { %723 = vperm.xlu1 %1184, %v1371_v1   ;;  %v408_v26 = vpop.permute.xlu1 %407  ;;  %v180_v43 = vadd.f32 %v176_v21, %v152_v39  ;;  %v400_v21 = vmin.f32 %v388_v61, %v1649_v31 }
 0x116   :  { %v426_v42 = vmin.f32 %v408_v26, %v1663_v52  ;;  %v316_v26 = vmin.f32 %v1623_v15, %v1600_v41 }
 0x117   :  { %v208_v29 = vadd.f32 %v204_v0, %v180_v43  ;;  %v492_v39 = vpop.permute.xlu0 %491 }
 0x118   :  { %v430_v59 = vadd.f32 %v426_v42, %v402_v20  ;;  %v457_v20 = vmin.f32 %v448_v38, %v1672_v40 }
 0x119   :  { %1185 = vset.pattern.permute.xlu1 %v1309_v45  ;;  %v416_v36 = vpop.permute.xlu1 %415  ;;  %v236_v44 = vadd.f32 %v232_v57, %v208_v29 }
 0x11a   :  { %v458_v23 = vadd.f32 %v454_v51, %v430_v59  ;;  %743 = vperm.xlu1 %1185, %v1376_v2   ;;  %v344_v51 = vmin.f32 %v1644_v49, %v1614_v62  ;;  %v509_v59 = vrot.slane %v1592_v34, %v1570_v7  ;;  %v428_v62 = vmin.f32 %v416_v36, %v1663_v52 }
 0x11b   :  { %v264_v9 = vadd.f32 %v260_v54, %v236_v44 }
 0x11d   :  { %v420_v14 = vpop.permute.xlu1 %419  ;;  %v292_v42 = vadd.f32 %v288_v48, %v264_v9 }
 0x11e   :  { %v429_v25 = vmin.f32 %v420_v14, %v1663_v52  ;;  %751 = vperm.xlu1 %1185, %v1371_v1   ;;  %v504_v14 = vpop.permute.xlu0 %503 }
 0x11f   :  { %v320_v60 = vadd.f32 %v316_v26, %v292_v42  ;;  %v513_v29 = vmin.f32 %v504_v14, %v509_v59 }
 0x120   :  { %v433_v18 = vadd.f32 %v429_v25, %v405_v13  ;;  %v372_v13 = vmin.f32 %v1655_v56, %v1633_v47 }
 0x121   :  { %v348_v15 = vadd.f32 %v344_v51, %v320_v60 }
 0x122   :  { %v461_v55 = vadd.f32 %v457_v20, %v433_v18  ;;  %1187 = vset.pattern.permute.xlu1 %v1310_v53  ;;  %v440_v35 = vpop.permute.xlu1 %439  ;;  %v1724_v18 = vld [vmem:[#allocation4 + $0x10] sm:$0xff] }
 0x123   :  { %v455_v10 = vmin.f32 %v440_v35, %v1672_v40  ;;  %771 = vperm.xlu1 %1187, %v1376_v2   ;;  %v376_v0 = vadd.f32 %v372_v13, %v348_v15  ;;  %v565_v13 = vrot.slane %v1724_v18, %v1460_v30 }
 0x125   :  { %v459_v11 = vadd.f32 %v455_v10, %v431_v17  ;;  %v404_v17 = vadd.f32 %v400_v21, %v376_v0 }
 0x126   :  { %v444_v16 = vpop.permute.xlu1 %443 }
 0x127   :  { %v487_v41 = vadd.f32 %v483_v27, %v459_v11  ;;  %1189 = vset.pattern.permute.xlu1 %v1309_v45  ;;  %v456_v47 = vmin.f32 %v444_v16, %v1672_v40  ;;  %v510_v45 = vmin.f32 %v492_v39, %v509_v59  ;;  %v432_v31 = vadd.f32 %v428_v62, %v404_v17  ;;  %v524_v27 = vpop.permute.xlu0 %523 }
 0x128   :  { %755 = vperm.xlu1 %1189, %v1385_v4   ;;  %v593_v17 = vrot.slane %v1724_v18, %v1475_v37 }
 0x129   :  { %v460_v43 = vadd.f32 %v456_v47, %v432_v31 }
 0x12b   :  { %v464_v49 = vpop.permute.xlu1 %463  ;;  %v548_v21 = vpop.permute.xlu0 %547 }
 0x12c   :  { %v482_v56 = vmin.f32 %v464_v49, %v481_v12  ;;  %1190 = vset.pattern.permute.xlu1 %v1310_v53  ;;  %v566_v62 = vmin.f32 %v548_v21, %v565_v13 }
 0x12d   :  { %779 = vperm.xlu1 %1190, %v1371_v1  }
 0x12e   :  { %v486_v61 = vadd.f32 %v482_v56, %v458_v23 }
 0x12f   :  { %v472_v38 = vpop.permute.xlu1 %471 }
 0x130   :  { %v514_v57 = vadd.f32 %v510_v45, %v486_v61  ;;  %v484_v34 = vmin.f32 %v472_v38, %v481_v12  ;;  %v560_v45 = vpop.permute.xlu0 %559 }
 0x131   :  { %1192 = vset.pattern.permute.xlu1 %v1311_v6  ;;  %v569_v38 = vmin.f32 %v560_v45, %v565_v13 }
 0x132   :  { %v488_v52 = vadd.f32 %v484_v34, %v460_v43  ;;  %803 = vperm.xlu1 %1192, %v1390_v5  }
 0x133   :  { %v476_v36 = vpop.permute.xlu1 %475 }
 0x134   :  { %v485_v40 = vmin.f32 %v476_v36, %v481_v12  ;;  %v537_v12 = vrot.slane %v1724_v18, %v1465_v32 }
 0x136   :  { %v489_v54 = vadd.f32 %v485_v40, %v461_v55  ;;  %1193 = vset.pattern.permute.xlu1 %v1310_v53  ;;  %v539_v60 = vmin.f32 %v524_v27, %v537_v12 }
 0x137   :  { %783 = vperm.xlu1 %1193, %v1385_v4  }
 0x138   :  { %v517_v25 = vadd.f32 %v513_v29, %v489_v54  ;;  %v496_v23 = vpop.permute.xlu1 %495 }
 0x139   :  { %v511_v20 = vmin.f32 %v496_v23, %v509_v59 }
 0x13b   :  { %v515_v44 = vadd.f32 %v511_v20, %v487_v41  ;;  %1194 = vset.pattern.permute.xlu1 %v1312_v22 }
 0x13c   :  { %827 = vperm.xlu1 %1194, %v1376_v2   ;;  %v500_v48 = vpop.permute.xlu1 %499 }
 0x13d   :  { %v512_v33 = vmin.f32 %v500_v48, %v509_v59  ;;  %v543_v41 = vadd.f32 %v539_v60, %v515_v44 }
 0x13f   :  { %v516_v9 = vadd.f32 %v512_v33, %v488_v52 }
 0x140   :  { %1196 = vset.pattern.permute.xlu1 %v1311_v6 }
 0x141   :  { %811 = vperm.xlu1 %1196, %v1385_v4   ;;  %v520_v53 = vpop.permute.xlu1 %519 }
 0x142   :  { %v538_v26 = vmin.f32 %v520_v53, %v537_v12 }
 0x144   :  { %v542_v55 = vadd.f32 %v538_v26, %v514_v57  ;;  %v580_v57 = vpop.permute.xlu0 %579 }
 0x145   :  { %1197 = vset.pattern.permute.xlu1 %v1312_v22  ;;  %v528_v35 = vpop.permute.xlu1 %527  ;;  %v595_v40 = vmin.f32 %v580_v57, %v593_v17 }
 0x146   :  { %v540_v10 = vmin.f32 %v528_v35, %v537_v12  ;;  %835 = vperm.xlu1 %1197, %v1371_v1   ;;  %v570_v56 = vadd.f32 %v566_v62, %v542_v55 }
 0x148   :  { %v544_v42 = vadd.f32 %v540_v10, %v516_v9  ;;  %v604_v20 = vpop.permute.xlu0 %603 }
 0x149   :  { %v532_v51 = vpop.permute.xlu1 %531 }
 0x14a   :  { %v541_v11 = vmin.f32 %v532_v51, %v537_v12  ;;  %1199 = vset.pattern.permute.xlu1 %v1313_v28  ;;  %v649_v12 = vrot.slane %v1724_v18, %v1515_v63 }
 0x14b   :  { %859 = vperm.xlu1 %1199, %v1390_v5  }
 0x14c   :  { %v545_v6 = vadd.f32 %v541_v11, %v517_v25  ;;  %v616_v26 = vpop.permute.xlu0 %615 }
 0x14e   :  { %v552_v16 = vpop.permute.xlu1 %551  ;;  %v573_v52 = vadd.f32 %v569_v38, %v545_v6 }
 0x14f   :  { %v567_v15 = vmin.f32 %v552_v16, %v565_v13  ;;  %1200 = vset.pattern.permute.xlu1 %v1312_v22 }
 0x150   :  { %839 = vperm.xlu1 %1200, %v1385_v4  }
 0x151   :  { %v571_v59 = vadd.f32 %v567_v15, %v543_v41  ;;  %v677_v41 = vrot.slane %v1724_v18, %v1531_v19 }
 0x152   :  { %v556_v39 = vpop.permute.xlu1 %555 }
 0x153   :  { %v568_v0 = vmin.f32 %v556_v39, %v565_v13  ;;  %v599_v25 = vadd.f32 %v595_v40, %v571_v59 }
 0x154   :  { %1201 = vset.pattern.permute.xlu1 %v1314_v58 }
 0x155   :  { %v572_v49 = vadd.f32 %v568_v0, %v544_v42  ;;  %883 = vperm.xlu1 %1201, %v1376_v2   ;;  %v636_v42 = vpop.permute.xlu0 %635  ;;  %v63_v0 = vld [vmem:[%s1896_s3 + $0x10] sm:$0xff] }
 0x156   :  { %v651_v13 = vmin.f32 %v636_v42, %v649_v12 }
 0x157   :  { %v576_v47 = vpop.permute.xlu1 %575 }
 0x158   :  { %v594_v31 = vmin.f32 %v576_v47, %v593_v17  ;;  %v705_v47 = vrot.slane %v1724_v18, %v1554_v50 }
 0x159   :  { %1203 = vset.pattern.permute.xlu1 %v1313_v28  ;;  %v621_v28 = vrot.slane %v1724_v18, %v1494_v46  ;;  %v660_v59 = vpop.permute.xlu0 %659 }
 0x15a   :  { %v598_v22 = vadd.f32 %v594_v31, %v570_v56  ;;  %867 = vperm.xlu1 %1203, %v1385_v4   ;;  %v64_v56 = vld [vmem:[%s1896_s3 + $0x18] sm:$0xff] }
 0x15b   :  { %v584_v61 = vpop.permute.xlu1 %583  ;;  %v622_v33 = vmin.f32 %v604_v20, %v621_v28 }
 0x15c   :  { %v596_v43 = vmin.f32 %v584_v61, %v593_v17 }
 0x15e   :  { %v600_v34 = vadd.f32 %v596_v43, %v572_v49  ;;  %1204 = vset.pattern.permute.xlu1 %v1314_v58  ;;  %v678_v49 = vmin.f32 %v660_v59, %v677_v41 }
 0x15f   :  { %891 = vperm.xlu1 %1204, %v1371_v1   ;;  %v588_v14 = vpop.permute.xlu1 %587 }
 0x160   :  { %v597_v36 = vmin.f32 %v588_v14, %v593_v17 }
 0x162   :  { %v601_v29 = vadd.f32 %v597_v36, %v573_v52 }
 0x163   :  { %1206 = vset.pattern.permute.xlu1 %v1315_v8 }
 0x164   :  { %915 = vperm.xlu1 %1206, %v1390_v5   ;;  %v608_v54 = vpop.permute.xlu1 %607  ;;  %v626_v5 = vadd.f32 %v622_v33, %v598_v22  ;;  %v672_v22 = vpop.permute.xlu0 %671 }
 0x165   :  { %v623_v23 = vmin.f32 %v608_v54, %v621_v28  ;;  %v681_v57 = vmin.f32 %v672_v22, %v677_v41 }
 0x167   :  { %v627_v44 = vadd.f32 %v623_v23, %v599_v25  ;;  %v1780_v25 = vrot.slane %v1724_v18, %v1570_v7 }
 0x168   :  { %1207 = vset.pattern.permute.xlu1 %v1314_v58  ;;  %v612_v1 = vpop.permute.xlu1 %611  ;;  %v625_v58 = vmin.f32 %v616_v26, %v621_v28  ;;  %v692_v14 = vpop.permute.xlu0 %691 }
 0x169   :  { %v624_v48 = vmin.f32 %v612_v1, %v621_v28  ;;  %895 = vperm.xlu1 %1207, %v1385_v4   ;;  %v655_v15 = vadd.f32 %v651_v13, %v627_v44  ;;  %v707_v28 = vmin.f32 %v692_v14, %v705_v47 }
 0x16a   :  { %v629_v60 = vadd.f32 %v625_v58, %v601_v29 }
 0x16b   :  { %v628_v9 = vadd.f32 %v624_v48, %v600_v34 }
 0x16c   :  { %v716_v1 = vpop.permute.xlu0 %715 }
 0x16d   :  { %1208 = vset.pattern.permute.xlu1 %v1316_v24  ;;  %v632_v53 = vpop.permute.xlu1 %631 }
 0x16e   :  { %v650_v55 = vmin.f32 %v632_v53, %v649_v12  ;;  %939 = vperm.xlu1 %1208, %v1376_v2   ;;  %v1230_v2 = vld [vmem:[%s1894_s1 + $0x10] sm:$0xff]  ;;  %v734_v53 = vmin.f32 %v716_v1, %v1780_v25 }
 0x170   :  { %v654_v35 = vadd.f32 %v650_v55, %v626_v5 }
 0x171   :  { %v640_v10 = vpop.permute.xlu1 %639 }
 0x172   :  { %v652_v27 = vmin.f32 %v640_v10, %v649_v12  ;;  %1210 = vset.pattern.permute.xlu1 %v1315_v8  ;;  %v682_v31 = vadd.f32 %v678_v49, %v654_v35 }
 0x173   :  { %923 = vperm.xlu1 %1210, %v1385_v4   ;;  %v61_v4 = vld [vmem:[%s1896_s3] sm:$0xff] }
 0x174   :  { %v656_v51 = vadd.f32 %v652_v27, %v628_v9  ;;  %v55_v9 = vld [vmem:[#allocation4 + $0x18] sm:$0xff] }
 0x175   :  { %v644_v11 = vpop.permute.xlu1 %643  ;;  %v1786_v26 = vrot.slane %v55_v9, %v1465_v32  ;;  %v817_v22 = vrot.slane %v55_v9, %v1475_v37  ;;  %v1822_v37 = vrot.slane %v55_v9, %v1531_v19 }
 0x176   :  { %v653_v6 = vmin.f32 %v644_v11, %v649_v12 }
 0x177   :  { %1211 = vset.pattern.permute.xlu1 %v1316_v24 }
 0x178   :  { %v657_v16 = vadd.f32 %v653_v6, %v629_v60  ;;  %947 = vperm.xlu1 %1211, %v1230_v2   ;;  %v1792_v60 = vpop.permute.xlu0 %727 }
 0x17a   :  { %v664_v8 = vpop.permute.xlu1 %663  ;;  %v685_v40 = vadd.f32 %v681_v57, %v657_v16 }
 0x17b   :  { %v679_v21 = vmin.f32 %v664_v8, %v677_v41 }
 0x17c   :  { %1212 = vset.pattern.permute.xlu1 %v1285_v3  ;;  %v748_v13 = vpop.permute.xlu0 %747 }
 0x17d   :  { %v683_v24 = vadd.f32 %v679_v21, %v655_v15  ;;  %968 = vperm.xlu1 %1212, %v61_v4   ;;  %v763_v49 = vmin.f32 %v748_v13, %v1786_v26 }
 0x17e   :  { %v668_v39 = vpop.permute.xlu1 %667 }
 0x17f   :  { %v680_v62 = vmin.f32 %v668_v39, %v677_v41  ;;  %v711_v20 = vadd.f32 %v707_v28, %v683_v24 }
 0x180   :  { %v776_v2 = vpop.permute.xlu0 %775 }
 0x181   :  { %v684_v17 = vadd.f32 %v680_v62, %v656_v51  ;;  %978 = vperm.xlu1 %1212, %v63_v0  }
 0x183   :  { %v688_v45 = vpop.permute.xlu1 %687 }
 0x184   :  { %v706_v61 = vmin.f32 %v688_v45, %v705_v47  ;;  %v800_v41 = vpop.permute.xlu0 %799 }
 0x185   :  { %983 = vperm.xlu1 %1212, %v64_v56  }
 0x186   :  { %v710_v38 = vadd.f32 %v706_v61, %v682_v31 }
 0x187   :  { %v696_v43 = vpop.permute.xlu1 %695 }
 0x188   :  { %v708_v34 = vmin.f32 %v696_v43, %v705_v47  ;;  %v738_v35 = vadd.f32 %v734_v53, %v710_v38  ;;  %v808_v4 = vpop.permute.xlu0 %807  ;;  %v1810_v43 = vrot.slane %v55_v9, %v1494_v46  ;;  %v818_v53 = vmin.f32 %v800_v41, %v817_v22 }
 0x18a   :  { %v712_v52 = vadd.f32 %v708_v34, %v684_v17  ;;  %v789_v17 = vrot.slane %v55_v9, %v1460_v30 }
 0x18b   :  { %v700_v36 = vpop.permute.xlu1 %699 }
 0x18c   :  { %v709_v29 = vmin.f32 %v700_v36, %v705_v47  ;;  %v832_v21 = vpop.permute.xlu0 %831  ;;  %v791_v31 = vmin.f32 %v776_v2, %v789_v17  ;;  %v1818_v36 = vrot.slane %v55_v9, %v1515_v63 }
 0x18d   :  { %v847_v30 = vmin.f32 %v832_v21, %v1810_v43 }
 0x18e   :  { %v1776_v54 = vadd.f32 %v709_v29, %v685_v40 }
 0x190   :  { %v720_v23 = vpop.permute.xlu1 %719  ;;  %v856_v24 = vpop.permute.xlu0 %855 }
 0x191   :  { %v735_v44 = vmin.f32 %v720_v23, %v1780_v25  ;;  %v874_v41 = vmin.f32 %v856_v24, %v1818_v36 }
 0x193   :  { %v739_v48 = vadd.f32 %v735_v44, %v711_v20  ;;  %v1826_v44 = vrot.slane %v55_v9, %v1554_v50 }
 0x194   :  { %v724_v33 = vpop.permute.xlu1 %723  ;;  %v1800_v0 = vpop.permute.xlu0 %863 }
 0x195   :  { %v736_v12 = vmin.f32 %v724_v33, %v1780_v25  ;;  %v767_v45 = vadd.f32 %v763_v49, %v739_v48  ;;  %v1829_v48 = vrot.slane %v55_v9, %v1570_v7  ;;  %v876_v24 = vmin.f32 %v1800_v0, %v1818_v36 }
 0x197   :  { %v740_v5 = vadd.f32 %v736_v12, %v712_v52  ;;  %v795_v57 = vadd.f32 %v791_v31, %v767_v45 }
 0x198   :  { %v888_v47 = vpop.permute.xlu0 %887 }
 0x199   :  { %v744_v55 = vpop.permute.xlu1 %743  ;;  %v903_v20 = vmin.f32 %v888_v47, %v1822_v37 }
 0x19a   :  { %v762_v18 = vmin.f32 %v744_v55, %v1786_v26 }
 0x19c   :  { %v766_v10 = vadd.f32 %v762_v18, %v738_v35  ;;  %v1807_v61 = vpop.permute.xlu0 %911 }
 0x19d   :  { %v752_v58 = vpop.permute.xlu1 %751 }
 0x19e   :  { %v764_v27 = vmin.f32 %v752_v58, %v1786_v26 }
 0x1a0   :  { %v768_v42 = vadd.f32 %v764_v27, %v740_v5  ;;  %v1814_v14 = vpop.permute.xlu0 %919  ;;  %v737_v27 = vmin.f32 %v1792_v60, %v1780_v25 }
 0x1a2   :  { %v772_v51 = vpop.permute.xlu1 %771 }
 0x1a3   :  { %v790_v1 = vmin.f32 %v772_v51, %v789_v17  ;;  %v820_v51 = vmin.f32 %v808_v4, %v817_v22 }
 0x1a4   :  { %v944_v46 = vpop.permute.xlu0 %943 }
 0x1a5   :  { %v794_v5 = vadd.f32 %v790_v1, %v766_v10  ;;  %v959_v35 = vmin.f32 %v944_v46, %v1829_v48  ;;  %v1843_v10 = vld [vmem:[%s1897_s4] ss:$0 sm:$0xff] }
 0x1a7   :  { %v1790_v11 = vpop.permute.xlu1 %755  ;;  %v822_v7 = vadd.f32 %v818_v53, %v794_v5 }
 0x1a8   :  { %v1832_v19 = vpop.permute.xlu0 %951 }
 0x1ac   :  { %v780_v6 = vpop.permute.xlu1 %779  ;;  %v974_v2 = vpop.permute.xlu0 %973 }
 0x1ad   :  { %v792_v55 = vmin.f32 %v780_v6, %v789_v17 }
 0x1af   :  { %v796_v9 = vadd.f32 %v792_v55, %v768_v42  ;;  %v741_v42 = vadd.f32 %v737_v27, %v1776_v54 }
 0x1b1   :  { %v804_v16 = vpop.permute.xlu1 %803  ;;  %v824_v4 = vadd.f32 %v820_v51, %v796_v9 }
 0x1b2   :  { %v819_v38 = vmin.f32 %v804_v16, %v817_v22  ;;  %v765_v16 = vmin.f32 %v1790_v11, %v1786_v26  ;;  %v993_v11 = vadd.f32 %v1843_v10, %v974_v2 }
 0x1b4   :  { %v823_v52 = vadd.f32 %v819_v38, %v795_v57 }
 0x1b6   :  { %v1794_v32 = vpop.permute.xlu1 %783  ;;  %v851_v28 = vadd.f32 %v847_v30, %v823_v52  ;;  %v932_v30 = vmin.f32 %v1814_v14, %v1826_v44  ;;  %v961_v14 = vmin.f32 %v1832_v19, %v1829_v48 }
 0x1b7   :  { %v793_v60 = vmin.f32 %v1794_v32, %v789_v17  ;;  %v930_v17 = vmin.f32 %v1807_v61, %v1826_v44 }
 0x1bb   :  { %v828_v8 = vpop.permute.xlu1 %827 }
 0x1bc   :  { %v846_v50 = vmin.f32 %v828_v8, %v1810_v43 }
 0x1be   :  { %v850_v6 = vadd.f32 %v846_v50, %v822_v7 }
 0x1c0   :  { %v1796_v15 = vpop.permute.xlu1 %811  ;;  %v878_v47 = vadd.f32 %v874_v41, %v850_v6 }
 0x1c1   :  { %v821_v49 = vmin.f32 %v1796_v15, %v817_v22 }
 0x1c5   :  { %v1798_v59 = vpop.permute.xlu1 %835 }
 0x1c6   :  { %v848_v8 = vmin.f32 %v1798_v59, %v1810_v43 }
 0x1c8   :  { %v852_v45 = vadd.f32 %v848_v8, %v824_v4 }
 0x1ca   :  { %v860_v39 = vpop.permute.xlu1 %859  ;;  %v880_v52 = vadd.f32 %v876_v24, %v852_v45 }
 0x1cb   :  { %v875_v40 = vmin.f32 %v860_v39, %v1818_v36  ;;  %v769_v39 = vadd.f32 %v765_v16, %v741_v42 }
 0x1cd   :  { %v879_v23 = vadd.f32 %v875_v40, %v851_v28  ;;  %v797_v59 = vadd.f32 %v793_v60, %v769_v39 }
 0x1cf   :  { %v1802_v62 = vpop.permute.xlu1 %839  ;;  %v907_v12 = vadd.f32 %v903_v20, %v879_v23  ;;  %v825_v57 = vadd.f32 %v821_v49, %v797_v59 }
 0x1d0   :  { %v849_v54 = vmin.f32 %v1802_v62, %v1810_v43 }
 0x1d2   :  { %v853_v0 = vadd.f32 %v849_v54, %v825_v57 }
 0x1d4   :  { %v884_v56 = vpop.permute.xlu1 %883 }
 0x1d5   :  { %v902_v26 = vmin.f32 %v884_v56, %v1822_v37 }
 0x1d7   :  { %v906_v32 = vadd.f32 %v902_v26, %v878_v47 }
 0x1d9   :  { %v1812_v34 = vpop.permute.xlu1 %867  ;;  %v934_v62 = vadd.f32 %v930_v17, %v906_v32 }
 0x1da   :  { %v877_v15 = vmin.f32 %v1812_v34, %v1818_v36 }
 0x1dc   :  { %v881_v46 = vadd.f32 %v877_v15, %v853_v0 }
 0x1de   :  { %v892_v29 = vpop.permute.xlu1 %891 }
 0x1df   :  { %v904_v56 = vmin.f32 %v892_v29, %v1822_v37  ;;  %v65_v29 = vld [vmem:[%s1898_s5] sm:$0xff] }
 0x1e0   :  { %vm1016_vm0 = vnez %v65_v29 }
 0x1e1   :  { %v908_v43 = vadd.f32 %v904_v56, %v880_v52 }
 0x1e3   :  { %v916_v63 = vpop.permute.xlu1 %915 }
 0x1e4   :  { %v931_v33 = vmin.f32 %v916_v63, %v1826_v44  ;;  %v936_v63 = vadd.f32 %v932_v30, %v908_v43 }
 0x1e6   :  { %v935_v18 = vadd.f32 %v931_v33, %v907_v12 }
 0x1e8   :  { %v896_v58 = vpop.permute.xlu1 %895  ;;  %v963_v13 = vadd.f32 %v959_v35, %v935_v18  ;;  %v1025_v35 = vsel %vm1016_vm0, 16843009, %v1285_v3 }
 0x1e9   :  { %v905_v40 = vmin.f32 %v896_v58, %v1822_v37  ;;  %v1027_v7 = vunpack.c.1.s8 %v1025_v35  ;;  %v1026_v9 = vunpack.c.0.s8 %v1025_v35  ;;  %v1028_v42 = vunpack.c.2.s8 %v1025_v35 }
 0x1ea   :  { %v997_v21 = vmul.f32 2.0, %v963_v13  ;;  %v1029_v47 = vunpack.c.3.s8 %v1025_v35 }
 0x1eb   :  { %v909_v20 = vadd.f32 %v905_v40, %v881_v46  ;;  %v1032_v6 = vpack.c.b16 %v1027_v7, %v1027_v7  ;;  %v1030_v41 = vpack.c.b16 %v1026_v9, %v1026_v9  ;;  %v1034_v49 = vpack.c.b16 %v1028_v42, %v1028_v42 }
 0x1ec   :  { %v1001_v38 = vsub.f32 %v993_v11, %v997_v21  ;;  %v1036_v59 = vpack.c.b16 %v1029_v47, %v1029_v47 }
 0x1ed   :  { %v940_v25 = vpop.permute.xlu1 %939  ;;  %v1033_v26 = vpack.c.b8 %v1032_v6, %v1032_v6  ;;  %v1031_v11 = vpack.c.b8 %v1030_v41, %v1030_v41  ;;  %v1035_v24 = vpack.c.b8 %v1034_v49, %v1034_v49 }
 0x1ee   :  { %v958_v22 = vmin.f32 %v940_v25, %v1829_v48  ;;  %v1005_v28 = vmul.f32 -0.01, %v1001_v38  ;;  %v1037_v56 = vpack.c.b8 %v1036_v59, %v1036_v59 }
 0x1ef   :  { %vm1039_vm1 = vnez %v1033_v26  ;;  %vm1038_vm2 = vnez %v1031_v11  ;;  %vm1040_vm3 = vnez %v1035_v24 }
 0x1f0   :  { %v962_v23 = vadd.f32 %v958_v22, %v934_v62  ;;  %v1010_v1 = vmul.f32 1.442695, %v1005_v28  ;;  %v1042_v32 = vsel %vm1038_vm2, 16843009, %v1285_v3  ;;  %v1044_v15 = vsel %vm1040_vm3, 16843009, %v1285_v3 }
 0x1f1   :  { %v1046_v57 = vunpack.c.0.s8 %v1042_v32  ;;  %vm1041_vm4 = vnez %v1037_v56  ;;  %v1048_v30 = vunpack.c.0.s8 %v1044_v15 }
 0x1f2   :  { %v924_v31 = vpop.permute.xlu1 %923  ;;  %v996_v33 = vmul.f32 2.0, %v962_v23  ;;  %1214 = vpow2.f32 %v1010_v1  ;;  %v1045_v62 = vsel %vm1041_vm4, 16843009, %v1285_v3 }
 0x1f3   :  { %v933_v34 = vmin.f32 %v924_v31, %v1826_v44  ;;  %v1043_v31 = vsel %vm1039_vm1, 16843009, %v1285_v3  ;;  %vm1050_vm6 = vcmp.ne.s32.totalorder %v1046_v57, 0  ;;  %vm1052_vm7 = vcmp.ne.s32.totalorder %v1048_v30, 0 }
 0x1f4   :  { %v1047_v38 = vunpack.c.0.s8 %v1043_v31  ;;  %v1049_v46 = vunpack.c.0.s8 %v1045_v62 }
 0x1f5   :  { %v937_v12 = vadd.f32 %v933_v34, %v909_v20 }
 0x1f6   :  { %vm1051_vm5 = vcmp.ne.s32.totalorder %v1047_v38, 0  ;;  %vm1053_vm8 = vcmp.ne.s32.totalorder %v1049_v46, 0 }
 0x1f7   :  { %v948_v61 = vpop.permute.xlu1 %947  ;;  %v965_v18 = vadd.f32 %v961_v14, %v937_v12 }
 0x1f8   :  { %v960_v36 = vmin.f32 %v948_v61, %v1829_v48 }
 0x1f9   :  { %v999_v2 = vmul.f32 2.0, %v965_v18 }
 0x1fa   :  { %v964_v53 = vadd.f32 %v960_v36, %v936_v63 }
 0x1fc   :  { %v969_v37 = vpop.permute.xlu1 %968  ;;  %v998_v58 = vmul.f32 2.0, %v964_v53  ;;  %v1215_v60 = vpop.eup %1214  ;;  %v1068_v53 = vld [vmem:[#allocation7] sm:$0x1] }
 0x1fd   :  { %v992_v5 = vadd.f32 %v1843_v10, %v969_v37  ;;  %v1019_v39 = vmul.f32 1.442695, %v1215_v60 }
 0x1ff   :  { %v1000_v55 = vsub.f32 %v992_v5, %v996_v33 }
 0x200   :  { %v979_v44 = vpop.permute.xlu1 %978 }
 0x201   :  { %v1004_v50 = vmul.f32 -0.01, %v1000_v55  ;;  %v994_v27 = vadd.f32 %v1843_v10, %v979_v44 }
 0x203   :  { %v1008_v48 = vmul.f32 1.442695, %v1004_v50  ;;  %v1002_v19 = vsub.f32 %v994_v27, %v998_v58 }
 0x204   :  { %v984_v51 = vpop.permute.xlu1 %983 }
 0x205   :  { %1216 = vpow2.f32 %v1008_v48  ;;  %v1006_v13 = vmul.f32 -0.01, %v1002_v19  ;;  %v995_v16 = vadd.f32 %v1843_v10, %v984_v51 }
 0x207   :  { %v1012_v8 = vmul.f32 1.442695, %v1006_v13  ;;  %v1003_v25 = vsub.f32 %v995_v16, %v999_v2 }
 0x209   :  { %1218 = vpow2.f32 %v1012_v8  ;;  %v1007_v4 = vmul.f32 -0.01, %v1003_v25 }
 0x20b   :  { %v1014_v21 = vmul.f32 1.442695, %v1007_v4 }
 0x20d   :  { %1220 = vpow2.f32 %v1014_v21 }
 0x20e   :  { %1222 = vpow2.f32 %v1019_v39 }
 0x20f   :  { %v1217_v45 = vpop.eup %1216 }
 0x210   :  { %v1017_v10 = vmul.f32 1.442695, %v1217_v45 }
 0x212   :  { %1224 = vpow2.f32 %v1017_v10 }
 0x213   :  { %v1219_v54 = vpop.eup %1218 }
 0x214   :  { %v1021_v17 = vmul.f32 1.442695, %v1219_v54 }
 0x216   :  { %1226 = vpow2.f32 %v1021_v17 }
 0x217   :  { %v1221_v52 = vpop.eup %1220 }
 0x218   :  { %v1023_v22 = vmul.f32 1.442695, %v1221_v52  ;;  %v1223_v0 = vpop.eup %1222 }
 0x219   :  { %v1055_v40 = vsel %vm1051_vm5, %v1223_v0, 0.0 }
 0x21a   :  { %1228 = vpow2.f32 %v1023_v22 }
 0x21c   :  { %v1225_v43 = vpop.eup %1224 }
 0x21d   :  { %v1054_v28 = vsel %vm1050_vm6, %v1225_v43, 0.0 }
 0x21e   :  { %v1058_v61 = vadd.f32 %v1055_v40, %v1054_v28 }
 0x220   :  { %v1227_v29 = vpop.eup %1226 }
 0x221   :  { %v1056_v23 = vsel %vm1052_vm7, %v1227_v29, 0.0 }
 0x222   :  { %v1059_v34 = vadd.f32 %v1058_v61, %v1056_v23 }
 0x224   :  { %v1229_v36 = vpop.eup %1228 }
 0x225   :  { %v1057_v20 = vsel %vm1053_vm8, %v1229_v36, 0.0 }
 0x226   :  { %v1060_v1 = vadd.f32 %v1059_v34, %v1057_v20 }
 0x228   :  { %v1061_v63 = vrot.slane %v1060_v1, 4 }
 0x22a   :  { %v1062_v14 = vadd.f32 %v1061_v63, %v1060_v1 }
 0x22c   :  { %v1063_v37 = vrot.slane %v1062_v14, 2 }
 0x22e   :  { %v1064_v33 = vadd.f32 %v1063_v37, %v1062_v14 }
 0x230   :  { %v1065_v12 = vrot.slane %v1064_v33, 1 }
 0x232   :  { %v1066_v3 = vadd.f32 %v1065_v12, %v1064_v33 }
 0x234   :  { %v1069_v5 = vadd.f32 %v1068_v53, %v1066_v3 }
 0x236   :  { %1070 = vst [vmem:[#allocation7] sm:$0x1] %v1069_v5 }
 0x237 PF:  { %s1317_s5 = smov [#allocation7]  }
 0x238   :  { %s1089_s30 = sshll.u32 %s1317_s5, 4  ;;  %s1090_s30 = int_to_ptr.vmem [resolvable:$true] %s1089_s30 }
 0x239   :  { %s1255_s7 = scalar_lea.vmem %s1090_s30, 16  ;;  %s1259_s8 = scalar_lea.vmem %s1090_s30, 32 }
 0x23a   :  { %p1256_p9 = scmp.ne.s32.totalorder %s1090_s30, %s1255_s7  ;;  %p1260_p10 = scmp.lt.s32.totalorder %s1090_s30, %s1090_s30 }
 0x23b   :  { %p1261_p11 = scmp.lt.s32.totalorder %s1259_s8, %s1255_s7 }
 0x23d   :  { %v1074_v55 = vld [vmem:[#allocation7] sm:$0x1]  ;;  %p1262_p12 = por %p1261_p11, %p1260_p10 }
 0x23e   :  { %vm1075_vm9 = vcmp.gt.f32.partialorder %v1074_v55, 0.0 }
 0x23f   :  { %v1076_v35 = vsel %vm1075_vm9, %v1074_v55, 1.0  ;;  %p1263_p13 = pnand %p1262_p12, %p1256_p9 }
 0x240   :  { %1231 = vrcp.f32 %v1076_v35 }
 0x24a   :  { %v1232_v44 = vpop.eup %1231 }
 0x24b   :  { %v1078_v18 = vmul.f32 %v1232_v44, %v1076_v35 }
 0x24d   :  { %v1079_v58 = vsub.f32 2.0, %v1078_v18 }
 0x24f   :  { %v1080_v50 = vmul.f32 %v1232_v44, %v1079_v58 }
 0x251   :  { %v1081_v27 = vsel %vm1075_vm9, %v1080_v50, 0.0 }
 0x252   :  { %1082 = vst [vmem:[#allocation7] sm:$0x1] %v1081_v27 }
 0x253   :  { %1266 = shalt.err (!%p1263_p13)
}
 0x254   :  { %s1267_s11 = scalar_lea.hbm %s1899_s6, 16 }
 0x255   :  { %p1268_p0 = scmp.ne.s32.totalorder %s1899_s6, %s1267_s11  ;;  %p1271_p1 = scmp.lt.u32.totalorder %s1267_s11, %s1899_s6 }
 0x257   :  { %p1273_p2 = pnand %p1271_p1, %p1268_p0 }
 0x259   :  { %1276 = shalt.err (!%p1273_p2)
}
 0x25a   :  { %1092 = dma.vmem_to_hbm [thread:$0]  %s1090_s30, 16, %s1899_s6, [#allocation6]  }
 0x25b   :  { %1279 = dma.done.wait [#allocation6], 16  }
 0x25c   :  { %1280 = vsyncadd [#allocation6], 4294967280 }
 0x25d   :  { %1096 = vsyncpa [#allocation5], 1 }
 0x25e   :  { %1097 = vsyncpa [#allocation6], 1 }

</bundles_post_ra>
